<compile_context>
chip_gen: v5e
topology: v5e:2x2
jax: 0.10.0
libtpu: 0.0.40
codegen_flags: <defaults>
</compile_context>

<pallas_src>
import functools

import numpy as np
import jax
import jax.numpy as jnp
from jax.experimental import pallas as pl
from jax.experimental.pallas import tpu as pltpu

K = 4                          # kernel size of every (transposed) conv
N_TCONV = 3                    # transposed convs in the decoder
MARGIN = (K - 1) * N_TCONV     # 9: left zero margin consumed by the decoder


# ------------------------------ fused Pallas kernel -------------------------------

def _fused_kernel(x_ref,
                  we1, be1, we2, be2, we3, be3,
                  wd1, bd1, wd2, bd2, wd3, bd3,
                  o_ref, *, seq_len):
    L = seq_len

    def conv_layer(h, w_ref, b_ref, relu, valid_start, valid_len, use_mxu):
        """Valid 1-D conv along the row (length) axis of h: (rows, Cin) -> (rows-K+1, Cout).

        Weights are pre-laid-out as (K, Cin, Cout); the conv is K shifted
        contiguous slices accumulated with matmuls (no gather / im2col).
        Rows outside [valid_start, valid_start+valid_len) are zeroed so the
        zero margin doubles as the implicit padding of the downstream
        transposed convolutions.
        """
        rows_out = h.shape[0] - K + 1
        c_out = w_ref.shape[2]
        acc = jnp.zeros((rows_out, c_out), jnp.float32)
        for k in range(K):
            sl = h[k:k + rows_out, :]
            if use_mxu:
                acc = acc + jnp.dot(sl, w_ref[k], preferred_element_type=jnp.float32)
            else:                                   # Cin == 1: VPU broadcast outer product
                acc = acc + sl * w_ref[k]
        acc = acc + b_ref[...]
        if relu:
            acc = jnp.maximum(acc, 0.0)
        r = jax.lax.broadcasted_iota(jnp.int32, (rows_out, c_out), 0)
        keep = (r >= valid_start) & (r < valid_start + valid_len)
        return jnp.where(keep, acc, 0.0)

    h = x_ref[...]                                                   # (L+24, 1)

    # ---- encoder: Conv1d(1,16,4)+ReLU, Conv1d(16,64,4)+ReLU(+ReLU), Conv1d(64,256,4)+ReLU
    h = conv_layer(h, we1, be1, True, MARGIN, L - 3, use_mxu=False)  # (., 16)
    h = conv_layer(h, we2, be2, True, MARGIN, L - 6, use_mxu=True)   # (., 64)
    h = conv_layer(h, we3, be3, True, MARGIN, L - 9, use_mxu=True)   # (., 256)

    # ---- decoder: ConvTranspose1d == valid conv of flipped weights over the zero margin
    h = conv_layer(h, wd1, bd1, True, MARGIN - 3, L - 6, use_mxu=True)   # (., 64)
    h = conv_layer(h, wd2, bd2, True, MARGIN - 6, L - 3, use_mxu=True)   # (., 16)

    # last transposed conv: Cout == 1, no ReLU -> VPU multiply + lane reduction
    rows_out = h.shape[0] - K + 1
    acc = jnp.zeros((rows_out, h.shape[1]), jnp.float32)
    for k in range(K):
        acc = acc + h[k:k + rows_out, :] * wd3[k]                    # (rows_out, 16)
    out = jnp.sum(acc, axis=1, keepdims=True) + bd3[...]             # (rows_out, 1)
    o_ref[...] = out[0:L, :].astype(o_ref.dtype)


# ------------------------------ host-side wrapper ----------------------------------

def autoencoder_filter_forward(x, kp):
    """x: (B, L, 1) float32 -> (B, L, 1) float32 (matches the PyTorch module)."""
    B, L, _ = x.shape
    lbuf = L + 24   # 6 layers each consume K-1=3 rows; leaves >= L rows at the end
    xbuf = jnp.pad(x, ((0, 0), (MARGIN, lbuf - MARGIN - L), (0, 0)))

    order = ("e1_w", "e1_b", "e2_w", "e2_b", "e3_w", "e3_b",
             "d1_w", "d1_b", "d2_w", "d2_b", "d3_w", "d3_b")
    weights = [kp[name] for name in order]

    def full_spec(a):
        return pl.BlockSpec(a.shape, lambda b, n=a.ndim: (0,) * n)

    return pl.pallas_call(
        functools.partial(_fused_kernel, seq_len=L),
        out_shape=jax.ShapeDtypeStruct((B, L, 1), jnp.float32),
        grid=(B,),
        in_specs=[pl.BlockSpec((None, lbuf, 1), lambda b: (b, 0, 0))]
                 + [full_spec(a) for a in weights],
        out_specs=pl.BlockSpec((None, L, 1), lambda b: (b, 0, 0)),
        compiler_params=pltpu.CompilerParams(
            dimension_semantics=("parallel",)),     # batch shards over v7x's 2 TCs
    )(xbuf, *weights)


# ------------------------------ parameters -----------------------------------------

def init_params(key):
    """PyTorch-style init; weights kept in native Conv1d/ConvTranspose1d layouts."""
    def u(k, shape, fan_in):
        bound = 1.0 / float(fan_in) ** 0.5
        return jax.random.uniform(k, shape, jnp.float32, -bound, bound)

    ks = jax.random.split(key, 12)
    p = {}
    p["e1_w"] = u(ks[0], (16, 1, K), 1 * K);    p["e1_b"] = u(ks[1], (16,), 1 * K)
    p["e2_w"] = u(ks[2], (64, 16, K), 16 * K);  p["e2_b"] = u(ks[3], (64,), 16 * K)
    p["e3_w"] = u(ks[4], (256, 64, K), 64 * K); p["e3_b"] = u(ks[5], (256,), 64 * K)
    p["d1_w"] = u(ks[6], (256, 64, K), 64 * K); p["d1_b"] = u(ks[7], (64,), 64 * K)
    p["d2_w"] = u(ks[8], (64, 16, K), 16 * K);  p["d2_b"] = u(ks[9], (16,), 16 * K)
    p["d3_w"] = u(ks[10], (16, 1, K), 1 * K);   p["d3_b"] = u(ks[11], (1,), 1 * K)
    return p


def prepare_params(p):
    """One-time conversion to the kernel layout (flips/transposes hoisted out of fwd)."""
    def conv_w(w):        # Conv1d (Cout, Cin, K) -> (K, Cin, Cout)
        return jnp.transpose(w, (2, 1, 0))

    def tconv_w(w):       # ConvTranspose1d (Cin, Cout, K) -> flipped (K, Cin, Cout)
        return jnp.transpose(jnp.flip(w, axis=2), (2, 0, 1))

    def tconv_w_last(w):  # (Cin, 1, K) -> flipped (K, 1, Cin) for the VPU path of d3
        return jnp.transpose(jnp.flip(w, axis=2), (2, 1, 0))

    def bias(b):
        return b.reshape(1, -1)

    return {
        "e1_w": conv_w(p["e1_w"]),  "e1_b": bias(p["e1_b"]),
        "e2_w": conv_w(p["e2_w"]),  "e2_b": bias(p["e2_b"]),
        "e3_w": conv_w(p["e3_w"]),  "e3_b": bias(p["e3_b"]),
        "d1_w": tconv_w(p["d1_w"]), "d1_b": bias(p["d1_b"]),
        "d2_w": tconv_w(p["d2_w"]), "d2_b": bias(p["d2_b"]),
        "d3_w": tconv_w_last(p["d3_w"]), "d3_b": bias(p["d3_b"]),
    }


# ------------------------------ numpy reference -------------------------------------

def _ref_forward(x, p):
    x = np.asarray(x, np.float64)
    pn = {k: np.asarray(v, np.float64) for k, v in p.items()}

    def conv1d(h, w, b):                       # h (B,Cin,L), w (Cout,Cin,K)
        B, _, L = h.shape
        Cout, _, K_ = w.shape
        Lo = L - K_ + 1
        out = np.zeros((B, Cout, Lo))
        for j in range(Lo):
            out[:, :, j] = np.einsum("bck,ock->bo", h[:, :, j:j + K_], w)
        return out + b[None, :, None]

    def tconv1d(h, w, b):                      # h (B,Cin,L), w (Cin,Cout,K)
        B, _, L = h.shape
        _, Cout, K_ = w.shape
        out = np.zeros((B, Cout, L + K_ - 1))
        for j in range(L):
            for k in range(K_):
                out[:, :, j + k] += np.einsum("bc,co->bo", h[:, :, j], w[:, :, k])
        return out + b[None, :, None]

    relu = lambda a: np.maximum(a, 0.0)
    h = np.transpose(x, (0, 2, 1))
    h = relu(conv1d(h, pn["e1_w"], pn["e1_b"]))
    h = relu(conv1d(h, pn["e2_w"], pn["e2_b"]))
    h = relu(conv1d(h, pn["e3_w"], pn["e3_b"]))
    h = relu(tconv1d(h, pn["d1_w"], pn["d1_b"]))
    h = relu(tconv1d(h, pn["d2_w"], pn["d2_b"]))
    h = tconv1d(h, pn["d3_w"], pn["d3_b"])
    return np.transpose(h, (0, 2, 1))


# ---------------------------------- main --------------------------------------------

if __name__ == "__main__":
    key = jax.random.PRNGKey(0)
    k_x, k_p = jax.random.split(key)

    B, L, DIM = 2, 16, 1
    x = jax.random.normal(k_x, (B, L, DIM), dtype=jnp.float32)
    params = init_params(k_p)
    kparams = prepare_params(params)   # one-time weight flip/transpose/bias reshape

    fwd = jax.jit(autoencoder_filter_forward)
    y = jax.block_until_ready(fwd(x, kparams))

    assert y.shape == (B, L, DIM), f"unexpected output shape {y.shape}"
    assert jnp.all(jnp.isfinite(y)), "non-finite output"

    y_ref = _ref_forward(np.asarray(x), {k: np.asarray(v) for k, v in params.items()})
    err = float(np.max(np.abs(np.asarray(y, np.float64) - y_ref)))
    assert err < 1e-3, f"mismatch vs reference: max abs err {err}"

    print("KERNEL_OK")
</pallas_src>

<mosaic_0001>
module attributes {stable_mosaic.version = 11 : i64} {
  func.func @_fused_kernel(%arg0: i32, %arg1: memref<1x40x1xf32, #tpu.memory_space<vmem>>, %arg2: memref<4x1x16xf32, #tpu.memory_space<vmem>>, %arg3: memref<1x16xf32, #tpu.memory_space<vmem>>, %arg4: memref<4x16x64xf32, #tpu.memory_space<vmem>>, %arg5: memref<1x64xf32, #tpu.memory_space<vmem>>, %arg6: memref<4x64x256xf32, #tpu.memory_space<vmem>>, %arg7: memref<1x256xf32, #tpu.memory_space<vmem>>, %arg8: memref<4x256x64xf32, #tpu.memory_space<vmem>>, %arg9: memref<1x64xf32, #tpu.memory_space<vmem>>, %arg10: memref<4x64x16xf32, #tpu.memory_space<vmem>>, %arg11: memref<1x16xf32, #tpu.memory_space<vmem>>, %arg12: memref<4x1x16xf32, #tpu.memory_space<vmem>>, %arg13: memref<1x1xf32, #tpu.memory_space<vmem>>, %arg14: memref<1x16x1xf32, #tpu.memory_space<vmem>>) attributes {dimension_semantics = [#tpu.dimension_semantics<parallel>], iteration_bounds = array<i64: 2>, scalar_prefetch = 0 : i64, scratch_operands = 0 : i64, tpu.core_type = #tpu.core_type<tc>, window_params = [{transform_indices = @transform_0, window_bounds = array<i64: 1, 40, 1>}, {pipeline_mode = #tpu.pipeline_mode<synchronous>, transform_indices = @transform_1, window_bounds = array<i64: 4, 1, 16>}, {pipeline_mode = #tpu.pipeline_mode<synchronous>, transform_indices = @transform_2, window_bounds = array<i64: 1, 16>}, {pipeline_mode = #tpu.pipeline_mode<synchronous>, transform_indices = @transform_3, window_bounds = array<i64: 4, 16, 64>}, {pipeline_mode = #tpu.pipeline_mode<synchronous>, transform_indices = @transform_4, window_bounds = array<i64: 1, 64>}, {pipeline_mode = #tpu.pipeline_mode<synchronous>, transform_indices = @transform_5, window_bounds = array<i64: 4, 64, 256>}, {pipeline_mode = #tpu.pipeline_mode<synchronous>, transform_indices = @transform_6, window_bounds = array<i64: 1, 256>}, {pipeline_mode = #tpu.pipeline_mode<synchronous>, transform_indices = @transform_7, window_bounds = array<i64: 4, 256, 64>}, {pipeline_mode = #tpu.pipeline_mode<synchronous>, transform_indices = @transform_8, window_bounds = array<i64: 1, 64>}, {pipeline_mode = #tpu.pipeline_mode<synchronous>, transform_indices = @transform_9, window_bounds = array<i64: 4, 64, 16>}, {pipeline_mode = #tpu.pipeline_mode<synchronous>, transform_indices = @transform_10, window_bounds = array<i64: 1, 16>}, {pipeline_mode = #tpu.pipeline_mode<synchronous>, transform_indices = @transform_11, window_bounds = array<i64: 4, 1, 16>}, {pipeline_mode = #tpu.pipeline_mode<synchronous>, transform_indices = @transform_12, window_bounds = array<i64: 1, 1>}, {transform_indices = @transform_13, window_bounds = array<i64: 1, 16, 1>}]} {
    %c0 = arith.constant 0 : index
    %c0_0 = arith.constant 0 : index
    %c0_1 = arith.constant 0 : index
    %0 = vector.load %arg1[%c0, %c0_0, %c0_1] : memref<1x40x1xf32, #tpu.memory_space<vmem>>, vector<1x40x1xf32>
    %1 = vector.shape_cast %0 : vector<1x40x1xf32> to vector<40x1xf32>
    %cst = arith.constant 0.000000e+00 : f32
    %2 = vector.broadcast %cst : f32 to vector<37x16xf32>
    %3 = vector.extract_strided_slice %1 {offsets = [0, 0], sizes = [37, 1], strides = [1, 1]} : vector<40x1xf32> to vector<37x1xf32>
    %c0_2 = arith.constant 0 : index
    %c0_3 = arith.constant 0 : index
    %c0_4 = arith.constant 0 : index
    %4 = vector.load %arg2[%c0_2, %c0_3, %c0_4] : memref<4x1x16xf32, #tpu.memory_space<vmem>>, vector<1x1x16xf32>
    %5 = vector.shape_cast %4 : vector<1x1x16xf32> to vector<1x16xf32>
    %6 = vector.broadcast %3 : vector<37x1xf32> to vector<37x16xf32>
    %7 = vector.broadcast %5 : vector<1x16xf32> to vector<37x16xf32>
    %8 = arith.mulf %6, %7 : vector<37x16xf32>
    %9 = arith.addf %2, %8 : vector<37x16xf32>
    %10 = vector.extract_strided_slice %1 {offsets = [1, 0], sizes = [37, 1], strides = [1, 1]} : vector<40x1xf32> to vector<37x1xf32>
    %c1 = arith.constant 1 : index
    %c0_5 = arith.constant 0 : index
    %c0_6 = arith.constant 0 : index
    %11 = vector.load %arg2[%c1, %c0_5, %c0_6] : memref<4x1x16xf32, #tpu.memory_space<vmem>>, vector<1x1x16xf32>
    %12 = vector.shape_cast %11 : vector<1x1x16xf32> to vector<1x16xf32>
    %13 = vector.broadcast %10 : vector<37x1xf32> to vector<37x16xf32>
    %14 = vector.broadcast %12 : vector<1x16xf32> to vector<37x16xf32>
    %15 = arith.mulf %13, %14 : vector<37x16xf32>
    %16 = arith.addf %9, %15 : vector<37x16xf32>
    %17 = vector.extract_strided_slice %1 {offsets = [2, 0], sizes = [37, 1], strides = [1, 1]} : vector<40x1xf32> to vector<37x1xf32>
    %c2 = arith.constant 2 : index
    %c0_7 = arith.constant 0 : index
    %c0_8 = arith.constant 0 : index
    %18 = vector.load %arg2[%c2, %c0_7, %c0_8] : memref<4x1x16xf32, #tpu.memory_space<vmem>>, vector<1x1x16xf32>
    %19 = vector.shape_cast %18 : vector<1x1x16xf32> to vector<1x16xf32>
    %20 = vector.broadcast %17 : vector<37x1xf32> to vector<37x16xf32>
    %21 = vector.broadcast %19 : vector<1x16xf32> to vector<37x16xf32>
    %22 = arith.mulf %20, %21 : vector<37x16xf32>
    %23 = arith.addf %16, %22 : vector<37x16xf32>
    %24 = vector.extract_strided_slice %1 {offsets = [3, 0], sizes = [37, 1], strides = [1, 1]} : vector<40x1xf32> to vector<37x1xf32>
    %c3 = arith.constant 3 : index
    %c0_9 = arith.constant 0 : index
    %c0_10 = arith.constant 0 : index
    %25 = vector.load %arg2[%c3, %c0_9, %c0_10] : memref<4x1x16xf32, #tpu.memory_space<vmem>>, vector<1x1x16xf32>
    %26 = vector.shape_cast %25 : vector<1x1x16xf32> to vector<1x16xf32>
    %27 = vector.broadcast %24 : vector<37x1xf32> to vector<37x16xf32>
    %28 = vector.broadcast %26 : vector<1x16xf32> to vector<37x16xf32>
    %29 = arith.mulf %27, %28 : vector<37x16xf32>
    %30 = arith.addf %23, %29 : vector<37x16xf32>
    %c0_11 = arith.constant 0 : index
    %c0_12 = arith.constant 0 : index
    %31 = vector.load %arg3[%c0_11, %c0_12] : memref<1x16xf32, #tpu.memory_space<vmem>>, vector<1x16xf32>
    %32 = vector.broadcast %31 : vector<1x16xf32> to vector<37x16xf32>
    %33 = arith.addf %30, %32 : vector<37x16xf32>
    %cst_13 = arith.constant 0.000000e+00 : f32
    %34 = vector.broadcast %cst_13 : f32 to vector<37x16xf32>
    %35 = arith.maximumf %33, %34 : vector<37x16xf32>
    %36 = tpu.iota {dimensions = array<i32: 0>} : vector<37x16xi32>
    %c9_i32 = arith.constant 9 : i32
    %37 = vector.broadcast %c9_i32 : i32 to vector<37x16xi32>
    %38 = arith.cmpi sge, %36, %37 : vector<37x16xi32>
    %c22_i32 = arith.constant 22 : i32
    %39 = vector.broadcast %c22_i32 : i32 to vector<37x16xi32>
    %40 = arith.cmpi slt, %36, %39 : vector<37x16xi32>
    %41 = arith.andi %38, %40 : vector<37x16xi1>
    %cst_14 = arith.constant 0.000000e+00 : f32
    %42 = vector.broadcast %cst_14 : f32 to vector<37x16xf32>
    %43 = arith.select %41, %35, %42 : vector<37x16xi1>, vector<37x16xf32>
    %cst_15 = arith.constant 0.000000e+00 : f32
    %44 = vector.broadcast %cst_15 : f32 to vector<34x64xf32>
    %45 = vector.extract_strided_slice %43 {offsets = [0, 0], sizes = [34, 16], strides = [1, 1]} : vector<37x16xf32> to vector<34x16xf32>
    %c0_16 = arith.constant 0 : index
    %c0_17 = arith.constant 0 : index
    %c0_18 = arith.constant 0 : index
    %46 = vector.load %arg4[%c0_16, %c0_17, %c0_18] : memref<4x16x64xf32, #tpu.memory_space<vmem>>, vector<1x16x64xf32>
    %47 = vector.shape_cast %46 : vector<1x16x64xf32> to vector<16x64xf32>
    %cst_19 = arith.constant dense<0.000000e+00> : vector<34x64xf32>
    %48 = tpu.matmul %45, %47, %cst_19 {dimension_numbers = #tpu.dot_dimension_numbers<[1], [0], [0], [1], [0, 0, 1, 1], [], []>} : vector<34x16xf32>, vector<16x64xf32>, vector<34x64xf32> -> vector<34x64xf32>
    %49 = arith.addf %44, %48 : vector<34x64xf32>
    %50 = vector.extract_strided_slice %43 {offsets = [1, 0], sizes = [34, 16], strides = [1, 1]} : vector<37x16xf32> to vector<34x16xf32>
    %c1_20 = arith.constant 1 : index
    %c0_21 = arith.constant 0 : index
    %c0_22 = arith.constant 0 : index
    %51 = vector.load %arg4[%c1_20, %c0_21, %c0_22] : memref<4x16x64xf32, #tpu.memory_space<vmem>>, vector<1x16x64xf32>
    %52 = vector.shape_cast %51 : vector<1x16x64xf32> to vector<16x64xf32>
    %cst_23 = arith.constant dense<0.000000e+00> : vector<34x64xf32>
    %53 = tpu.matmul %50, %52, %cst_23 {dimension_numbers = #tpu.dot_dimension_numbers<[1], [0], [0], [1], [0, 0, 1, 1], [], []>} : vector<34x16xf32>, vector<16x64xf32>, vector<34x64xf32> -> vector<34x64xf32>
    %54 = arith.addf %49, %53 : vector<34x64xf32>
    %55 = vector.extract_strided_slice %43 {offsets = [2, 0], sizes = [34, 16], strides = [1, 1]} : vector<37x16xf32> to vector<34x16xf32>
    %c2_24 = arith.constant 2 : index
    %c0_25 = arith.constant 0 : index
    %c0_26 = arith.constant 0 : index
    %56 = vector.load %arg4[%c2_24, %c0_25, %c0_26] : memref<4x16x64xf32, #tpu.memory_space<vmem>>, vector<1x16x64xf32>
    %57 = vector.shape_cast %56 : vector<1x16x64xf32> to vector<16x64xf32>
    %cst_27 = arith.constant dense<0.000000e+00> : vector<34x64xf32>
    %58 = tpu.matmul %55, %57, %cst_27 {dimension_numbers = #tpu.dot_dimension_numbers<[1], [0], [0], [1], [0, 0, 1, 1], [], []>} : vector<34x16xf32>, vector<16x64xf32>, vector<34x64xf32> -> vector<34x64xf32>
    %59 = arith.addf %54, %58 : vector<34x64xf32>
    %60 = vector.extract_strided_slice %43 {offsets = [3, 0], sizes = [34, 16], strides = [1, 1]} : vector<37x16xf32> to vector<34x16xf32>
    %c3_28 = arith.constant 3 : index
    %c0_29 = arith.constant 0 : index
    %c0_30 = arith.constant 0 : index
    %61 = vector.load %arg4[%c3_28, %c0_29, %c0_30] : memref<4x16x64xf32, #tpu.memory_space<vmem>>, vector<1x16x64xf32>
    %62 = vector.shape_cast %61 : vector<1x16x64xf32> to vector<16x64xf32>
    %cst_31 = arith.constant dense<0.000000e+00> : vector<34x64xf32>
    %63 = tpu.matmul %60, %62, %cst_31 {dimension_numbers = #tpu.dot_dimension_numbers<[1], [0], [0], [1], [0, 0, 1, 1], [], []>} : vector<34x16xf32>, vector<16x64xf32>, vector<34x64xf32> -> vector<34x64xf32>
    %64 = arith.addf %59, %63 : vector<34x64xf32>
    %c0_32 = arith.constant 0 : index
    %c0_33 = arith.constant 0 : index
    %65 = vector.load %arg5[%c0_32, %c0_33] : memref<1x64xf32, #tpu.memory_space<vmem>>, vector<1x64xf32>
    %66 = vector.broadcast %65 : vector<1x64xf32> to vector<34x64xf32>
    %67 = arith.addf %64, %66 : vector<34x64xf32>
    %cst_34 = arith.constant 0.000000e+00 : f32
    %68 = vector.broadcast %cst_34 : f32 to vector<34x64xf32>
    %69 = arith.maximumf %67, %68 : vector<34x64xf32>
    %70 = tpu.iota {dimensions = array<i32: 0>} : vector<34x64xi32>
    %c9_i32_35 = arith.constant 9 : i32
    %71 = vector.broadcast %c9_i32_35 : i32 to vector<34x64xi32>
    %72 = arith.cmpi sge, %70, %71 : vector<34x64xi32>
    %c19_i32 = arith.constant 19 : i32
    %73 = vector.broadcast %c19_i32 : i32 to vector<34x64xi32>
    %74 = arith.cmpi slt, %70, %73 : vector<34x64xi32>
    %75 = arith.andi %72, %74 : vector<34x64xi1>
    %cst_36 = arith.constant 0.000000e+00 : f32
    %76 = vector.broadcast %cst_36 : f32 to vector<34x64xf32>
    %77 = arith.select %75, %69, %76 : vector<34x64xi1>, vector<34x64xf32>
    %cst_37 = arith.constant 0.000000e+00 : f32
    %78 = vector.broadcast %cst_37 : f32 to vector<31x256xf32>
    %79 = vector.extract_strided_slice %77 {offsets = [0, 0], sizes = [31, 64], strides = [1, 1]} : vector<34x64xf32> to vector<31x64xf32>
    %c0_38 = arith.constant 0 : index
    %c0_39 = arith.constant 0 : index
    %c0_40 = arith.constant 0 : index
    %80 = vector.load %arg6[%c0_38, %c0_39, %c0_40] : memref<4x64x256xf32, #tpu.memory_space<vmem>>, vector<1x64x256xf32>
    %81 = vector.shape_cast %80 : vector<1x64x256xf32> to vector<64x256xf32>
    %cst_41 = arith.constant dense<0.000000e+00> : vector<31x256xf32>
    %82 = tpu.matmul %79, %81, %cst_41 {dimension_numbers = #tpu.dot_dimension_numbers<[1], [0], [0], [1], [0, 0, 1, 1], [], []>} : vector<31x64xf32>, vector<64x256xf32>, vector<31x256xf32> -> vector<31x256xf32>
    %83 = arith.addf %78, %82 : vector<31x256xf32>
    %84 = vector.extract_strided_slice %77 {offsets = [1, 0], sizes = [31, 64], strides = [1, 1]} : vector<34x64xf32> to vector<31x64xf32>
    %c1_42 = arith.constant 1 : index
    %c0_43 = arith.constant 0 : index
    %c0_44 = arith.constant 0 : index
    %85 = vector.load %arg6[%c1_42, %c0_43, %c0_44] : memref<4x64x256xf32, #tpu.memory_space<vmem>>, vector<1x64x256xf32>
    %86 = vector.shape_cast %85 : vector<1x64x256xf32> to vector<64x256xf32>
    %cst_45 = arith.constant dense<0.000000e+00> : vector<31x256xf32>
    %87 = tpu.matmul %84, %86, %cst_45 {dimension_numbers = #tpu.dot_dimension_numbers<[1], [0], [0], [1], [0, 0, 1, 1], [], []>} : vector<31x64xf32>, vector<64x256xf32>, vector<31x256xf32> -> vector<31x256xf32>
    %88 = arith.addf %83, %87 : vector<31x256xf32>
    %89 = vector.extract_strided_slice %77 {offsets = [2, 0], sizes = [31, 64], strides = [1, 1]} : vector<34x64xf32> to vector<31x64xf32>
    %c2_46 = arith.constant 2 : index
    %c0_47 = arith.constant 0 : index
    %c0_48 = arith.constant 0 : index
    %90 = vector.load %arg6[%c2_46, %c0_47, %c0_48] : memref<4x64x256xf32, #tpu.memory_space<vmem>>, vector<1x64x256xf32>
    %91 = vector.shape_cast %90 : vector<1x64x256xf32> to vector<64x256xf32>
    %cst_49 = arith.constant dense<0.000000e+00> : vector<31x256xf32>
    %92 = tpu.matmul %89, %91, %cst_49 {dimension_numbers = #tpu.dot_dimension_numbers<[1], [0], [0], [1], [0, 0, 1, 1], [], []>} : vector<31x64xf32>, vector<64x256xf32>, vector<31x256xf32> -> vector<31x256xf32>
    %93 = arith.addf %88, %92 : vector<31x256xf32>
    %94 = vector.extract_strided_slice %77 {offsets = [3, 0], sizes = [31, 64], strides = [1, 1]} : vector<34x64xf32> to vector<31x64xf32>
    %c3_50 = arith.constant 3 : index
    %c0_51 = arith.constant 0 : index
    %c0_52 = arith.constant 0 : index
    %95 = vector.load %arg6[%c3_50, %c0_51, %c0_52] : memref<4x64x256xf32, #tpu.memory_space<vmem>>, vector<1x64x256xf32>
    %96 = vector.shape_cast %95 : vector<1x64x256xf32> to vector<64x256xf32>
    %cst_53 = arith.constant dense<0.000000e+00> : vector<31x256xf32>
    %97 = tpu.matmul %94, %96, %cst_53 {dimension_numbers = #tpu.dot_dimension_numbers<[1], [0], [0], [1], [0, 0, 1, 1], [], []>} : vector<31x64xf32>, vector<64x256xf32>, vector<31x256xf32> -> vector<31x256xf32>
    %98 = arith.addf %93, %97 : vector<31x256xf32>
    %c0_54 = arith.constant 0 : index
    %c0_55 = arith.constant 0 : index
    %99 = vector.load %arg7[%c0_54, %c0_55] : memref<1x256xf32, #tpu.memory_space<vmem>>, vector<1x256xf32>
    %100 = vector.broadcast %99 : vector<1x256xf32> to vector<31x256xf32>
    %101 = arith.addf %98, %100 : vector<31x256xf32>
    %cst_56 = arith.constant 0.000000e+00 : f32
    %102 = vector.broadcast %cst_56 : f32 to vector<31x256xf32>
    %103 = arith.maximumf %101, %102 : vector<31x256xf32>
    %104 = tpu.iota {dimensions = array<i32: 0>} : vector<31x256xi32>
    %c9_i32_57 = arith.constant 9 : i32
    %105 = vector.broadcast %c9_i32_57 : i32 to vector<31x256xi32>
    %106 = arith.cmpi sge, %104, %105 : vector<31x256xi32>
    %c16_i32 = arith.constant 16 : i32
    %107 = vector.broadcast %c16_i32 : i32 to vector<31x256xi32>
    %108 = arith.cmpi slt, %104, %107 : vector<31x256xi32>
    %109 = arith.andi %106, %108 : vector<31x256xi1>
    %cst_58 = arith.constant 0.000000e+00 : f32
    %110 = vector.broadcast %cst_58 : f32 to vector<31x256xf32>
    %111 = arith.select %109, %103, %110 : vector<31x256xi1>, vector<31x256xf32>
    %cst_59 = arith.constant 0.000000e+00 : f32
    %112 = vector.broadcast %cst_59 : f32 to vector<28x64xf32>
    %113 = vector.extract_strided_slice %111 {offsets = [0, 0], sizes = [28, 256], strides = [1, 1]} : vector<31x256xf32> to vector<28x256xf32>
    %c0_60 = arith.constant 0 : index
    %c0_61 = arith.constant 0 : index
    %c0_62 = arith.constant 0 : index
    %114 = vector.load %arg8[%c0_60, %c0_61, %c0_62] : memref<4x256x64xf32, #tpu.memory_space<vmem>>, vector<1x256x64xf32>
    %115 = vector.shape_cast %114 : vector<1x256x64xf32> to vector<256x64xf32>
    %cst_63 = arith.constant dense<0.000000e+00> : vector<28x64xf32>
    %116 = tpu.matmul %113, %115, %cst_63 {dimension_numbers = #tpu.dot_dimension_numbers<[1], [0], [0], [1], [0, 0, 1, 1], [], []>} : vector<28x256xf32>, vector<256x64xf32>, vector<28x64xf32> -> vector<28x64xf32>
    %117 = arith.addf %112, %116 : vector<28x64xf32>
    %118 = vector.extract_strided_slice %111 {offsets = [1, 0], sizes = [28, 256], strides = [1, 1]} : vector<31x256xf32> to vector<28x256xf32>
    %c1_64 = arith.constant 1 : index
    %c0_65 = arith.constant 0 : index
    %c0_66 = arith.constant 0 : index
    %119 = vector.load %arg8[%c1_64, %c0_65, %c0_66] : memref<4x256x64xf32, #tpu.memory_space<vmem>>, vector<1x256x64xf32>
    %120 = vector.shape_cast %119 : vector<1x256x64xf32> to vector<256x64xf32>
    %cst_67 = arith.constant dense<0.000000e+00> : vector<28x64xf32>
    %121 = tpu.matmul %118, %120, %cst_67 {dimension_numbers = #tpu.dot_dimension_numbers<[1], [0], [0], [1], [0, 0, 1, 1], [], []>} : vector<28x256xf32>, vector<256x64xf32>, vector<28x64xf32> -> vector<28x64xf32>
    %122 = arith.addf %117, %121 : vector<28x64xf32>
    %123 = vector.extract_strided_slice %111 {offsets = [2, 0], sizes = [28, 256], strides = [1, 1]} : vector<31x256xf32> to vector<28x256xf32>
    %c2_68 = arith.constant 2 : index
    %c0_69 = arith.constant 0 : index
    %c0_70 = arith.constant 0 : index
    %124 = vector.load %arg8[%c2_68, %c0_69, %c0_70] : memref<4x256x64xf32, #tpu.memory_space<vmem>>, vector<1x256x64xf32>
    %125 = vector.shape_cast %124 : vector<1x256x64xf32> to vector<256x64xf32>
    %cst_71 = arith.constant dense<0.000000e+00> : vector<28x64xf32>
    %126 = tpu.matmul %123, %125, %cst_71 {dimension_numbers = #tpu.dot_dimension_numbers<[1], [0], [0], [1], [0, 0, 1, 1], [], []>} : vector<28x256xf32>, vector<256x64xf32>, vector<28x64xf32> -> vector<28x64xf32>
    %127 = arith.addf %122, %126 : vector<28x64xf32>
    %128 = vector.extract_strided_slice %111 {offsets = [3, 0], sizes = [28, 256], strides = [1, 1]} : vector<31x256xf32> to vector<28x256xf32>
    %c3_72 = arith.constant 3 : index
    %c0_73 = arith.constant 0 : index
    %c0_74 = arith.constant 0 : index
    %129 = vector.load %arg8[%c3_72, %c0_73, %c0_74] : memref<4x256x64xf32, #tpu.memory_space<vmem>>, vector<1x256x64xf32>
    %130 = vector.shape_cast %129 : vector<1x256x64xf32> to vector<256x64xf32>
    %cst_75 = arith.constant dense<0.000000e+00> : vector<28x64xf32>
    %131 = tpu.matmul %128, %130, %cst_75 {dimension_numbers = #tpu.dot_dimension_numbers<[1], [0], [0], [1], [0, 0, 1, 1], [], []>} : vector<28x256xf32>, vector<256x64xf32>, vector<28x64xf32> -> vector<28x64xf32>
    %132 = arith.addf %127, %131 : vector<28x64xf32>
    %c0_76 = arith.constant 0 : index
    %c0_77 = arith.constant 0 : index
    %133 = vector.load %arg9[%c0_76, %c0_77] : memref<1x64xf32, #tpu.memory_space<vmem>>, vector<1x64xf32>
    %134 = vector.broadcast %133 : vector<1x64xf32> to vector<28x64xf32>
    %135 = arith.addf %132, %134 : vector<28x64xf32>
    %cst_78 = arith.constant 0.000000e+00 : f32
    %136 = vector.broadcast %cst_78 : f32 to vector<28x64xf32>
    %137 = arith.maximumf %135, %136 : vector<28x64xf32>
    %138 = tpu.iota {dimensions = array<i32: 0>} : vector<28x64xi32>
    %c6_i32 = arith.constant 6 : i32
    %139 = vector.broadcast %c6_i32 : i32 to vector<28x64xi32>
    %140 = arith.cmpi sge, %138, %139 : vector<28x64xi32>
    %c16_i32_79 = arith.constant 16 : i32
    %141 = vector.broadcast %c16_i32_79 : i32 to vector<28x64xi32>
    %142 = arith.cmpi slt, %138, %141 : vector<28x64xi32>
    %143 = arith.andi %140, %142 : vector<28x64xi1>
    %cst_80 = arith.constant 0.000000e+00 : f32
    %144 = vector.broadcast %cst_80 : f32 to vector<28x64xf32>
    %145 = arith.select %143, %137, %144 : vector<28x64xi1>, vector<28x64xf32>
    %cst_81 = arith.constant 0.000000e+00 : f32
    %146 = vector.broadcast %cst_81 : f32 to vector<25x16xf32>
    %147 = vector.extract_strided_slice %145 {offsets = [0, 0], sizes = [25, 64], strides = [1, 1]} : vector<28x64xf32> to vector<25x64xf32>
    %c0_82 = arith.constant 0 : index
    %c0_83 = arith.constant 0 : index
    %c0_84 = arith.constant 0 : index
    %148 = vector.load %arg10[%c0_82, %c0_83, %c0_84] : memref<4x64x16xf32, #tpu.memory_space<vmem>>, vector<1x64x16xf32>
    %149 = vector.shape_cast %148 : vector<1x64x16xf32> to vector<64x16xf32>
    %cst_85 = arith.constant dense<0.000000e+00> : vector<25x16xf32>
    %150 = tpu.matmul %147, %149, %cst_85 {dimension_numbers = #tpu.dot_dimension_numbers<[1], [0], [0], [1], [0, 0, 1, 1], [], []>} : vector<25x64xf32>, vector<64x16xf32>, vector<25x16xf32> -> vector<25x16xf32>
    %151 = arith.addf %146, %150 : vector<25x16xf32>
    %152 = vector.extract_strided_slice %145 {offsets = [1, 0], sizes = [25, 64], strides = [1, 1]} : vector<28x64xf32> to vector<25x64xf32>
    %c1_86 = arith.constant 1 : index
    %c0_87 = arith.constant 0 : index
    %c0_88 = arith.constant 0 : index
    %153 = vector.load %arg10[%c1_86, %c0_87, %c0_88] : memref<4x64x16xf32, #tpu.memory_space<vmem>>, vector<1x64x16xf32>
    %154 = vector.shape_cast %153 : vector<1x64x16xf32> to vector<64x16xf32>
    %cst_89 = arith.constant dense<0.000000e+00> : vector<25x16xf32>
    %155 = tpu.matmul %152, %154, %cst_89 {dimension_numbers = #tpu.dot_dimension_numbers<[1], [0], [0], [1], [0, 0, 1, 1], [], []>} : vector<25x64xf32>, vector<64x16xf32>, vector<25x16xf32> -> vector<25x16xf32>
    %156 = arith.addf %151, %155 : vector<25x16xf32>
    %157 = vector.extract_strided_slice %145 {offsets = [2, 0], sizes = [25, 64], strides = [1, 1]} : vector<28x64xf32> to vector<25x64xf32>
    %c2_90 = arith.constant 2 : index
    %c0_91 = arith.constant 0 : index
    %c0_92 = arith.constant 0 : index
    %158 = vector.load %arg10[%c2_90, %c0_91, %c0_92] : memref<4x64x16xf32, #tpu.memory_space<vmem>>, vector<1x64x16xf32>
    %159 = vector.shape_cast %158 : vector<1x64x16xf32> to vector<64x16xf32>
    %cst_93 = arith.constant dense<0.000000e+00> : vector<25x16xf32>
    %160 = tpu.matmul %157, %159, %cst_93 {dimension_numbers = #tpu.dot_dimension_numbers<[1], [0], [0], [1], [0, 0, 1, 1], [], []>} : vector<25x64xf32>, vector<64x16xf32>, vector<25x16xf32> -> vector<25x16xf32>
    %161 = arith.addf %156, %160 : vector<25x16xf32>
    %162 = vector.extract_strided_slice %145 {offsets = [3, 0], sizes = [25, 64], strides = [1, 1]} : vector<28x64xf32> to vector<25x64xf32>
    %c3_94 = arith.constant 3 : index
    %c0_95 = arith.constant 0 : index
    %c0_96 = arith.constant 0 : index
    %163 = vector.load %arg10[%c3_94, %c0_95, %c0_96] : memref<4x64x16xf32, #tpu.memory_space<vmem>>, vector<1x64x16xf32>
    %164 = vector.shape_cast %163 : vector<1x64x16xf32> to vector<64x16xf32>
    %cst_97 = arith.constant dense<0.000000e+00> : vector<25x16xf32>
    %165 = tpu.matmul %162, %164, %cst_97 {dimension_numbers = #tpu.dot_dimension_numbers<[1], [0], [0], [1], [0, 0, 1, 1], [], []>} : vector<25x64xf32>, vector<64x16xf32>, vector<25x16xf32> -> vector<25x16xf32>
    %166 = arith.addf %161, %165 : vector<25x16xf32>
    %c0_98 = arith.constant 0 : index
    %c0_99 = arith.constant 0 : index
    %167 = vector.load %arg11[%c0_98, %c0_99] : memref<1x16xf32, #tpu.memory_space<vmem>>, vector<1x16xf32>
    %168 = vector.broadcast %167 : vector<1x16xf32> to vector<25x16xf32>
    %169 = arith.addf %166, %168 : vector<25x16xf32>
    %cst_100 = arith.constant 0.000000e+00 : f32
    %170 = vector.broadcast %cst_100 : f32 to vector<25x16xf32>
    %171 = arith.maximumf %169, %170 : vector<25x16xf32>
    %172 = tpu.iota {dimensions = array<i32: 0>} : vector<25x16xi32>
    %c3_i32 = arith.constant 3 : i32
    %173 = vector.broadcast %c3_i32 : i32 to vector<25x16xi32>
    %174 = arith.cmpi sge, %172, %173 : vector<25x16xi32>
    %c16_i32_101 = arith.constant 16 : i32
    %175 = vector.broadcast %c16_i32_101 : i32 to vector<25x16xi32>
    %176 = arith.cmpi slt, %172, %175 : vector<25x16xi32>
    %177 = arith.andi %174, %176 : vector<25x16xi1>
    %cst_102 = arith.constant 0.000000e+00 : f32
    %178 = vector.broadcast %cst_102 : f32 to vector<25x16xf32>
    %179 = arith.select %177, %171, %178 : vector<25x16xi1>, vector<25x16xf32>
    %cst_103 = arith.constant 0.000000e+00 : f32
    %180 = vector.broadcast %cst_103 : f32 to vector<22x16xf32>
    %181 = vector.extract_strided_slice %179 {offsets = [0, 0], sizes = [22, 16], strides = [1, 1]} : vector<25x16xf32> to vector<22x16xf32>
    %c0_104 = arith.constant 0 : index
    %c0_105 = arith.constant 0 : index
    %c0_106 = arith.constant 0 : index
    %182 = vector.load %arg12[%c0_104, %c0_105, %c0_106] : memref<4x1x16xf32, #tpu.memory_space<vmem>>, vector<1x1x16xf32>
    %183 = vector.shape_cast %182 : vector<1x1x16xf32> to vector<1x16xf32>
    %184 = vector.broadcast %183 : vector<1x16xf32> to vector<22x16xf32>
    %185 = arith.mulf %181, %184 : vector<22x16xf32>
    %186 = arith.addf %180, %185 : vector<22x16xf32>
    %187 = vector.extract_strided_slice %179 {offsets = [1, 0], sizes = [22, 16], strides = [1, 1]} : vector<25x16xf32> to vector<22x16xf32>
    %c1_107 = arith.constant 1 : index
    %c0_108 = arith.constant 0 : index
    %c0_109 = arith.constant 0 : index
    %188 = vector.load %arg12[%c1_107, %c0_108, %c0_109] : memref<4x1x16xf32, #tpu.memory_space<vmem>>, vector<1x1x16xf32>
    %189 = vector.shape_cast %188 : vector<1x1x16xf32> to vector<1x16xf32>
    %190 = vector.broadcast %189 : vector<1x16xf32> to vector<22x16xf32>
    %191 = arith.mulf %187, %190 : vector<22x16xf32>
    %192 = arith.addf %186, %191 : vector<22x16xf32>
    %193 = vector.extract_strided_slice %179 {offsets = [2, 0], sizes = [22, 16], strides = [1, 1]} : vector<25x16xf32> to vector<22x16xf32>
    %c2_110 = arith.constant 2 : index
    %c0_111 = arith.constant 0 : index
    %c0_112 = arith.constant 0 : index
    %194 = vector.load %arg12[%c2_110, %c0_111, %c0_112] : memref<4x1x16xf32, #tpu.memory_space<vmem>>, vector<1x1x16xf32>
    %195 = vector.shape_cast %194 : vector<1x1x16xf32> to vector<1x16xf32>
    %196 = vector.broadcast %195 : vector<1x16xf32> to vector<22x16xf32>
    %197 = arith.mulf %193, %196 : vector<22x16xf32>
    %198 = arith.addf %192, %197 : vector<22x16xf32>
    %199 = vector.extract_strided_slice %179 {offsets = [3, 0], sizes = [22, 16], strides = [1, 1]} : vector<25x16xf32> to vector<22x16xf32>
    %c3_113 = arith.constant 3 : index
    %c0_114 = arith.constant 0 : index
    %c0_115 = arith.constant 0 : index
    %200 = vector.load %arg12[%c3_113, %c0_114, %c0_115] : memref<4x1x16xf32, #tpu.memory_space<vmem>>, vector<1x1x16xf32>
    %201 = vector.shape_cast %200 : vector<1x1x16xf32> to vector<1x16xf32>
    %202 = vector.broadcast %201 : vector<1x16xf32> to vector<22x16xf32>
    %203 = arith.mulf %199, %202 : vector<22x16xf32>
    %204 = arith.addf %198, %203 : vector<22x16xf32>
    %cst_116 = arith.constant dense<0.000000e+00> : vector<22xf32>
    %205 = vector.multi_reduction <add>, %204, %cst_116 [1] : vector<22x16xf32> to vector<22xf32>
    %206 = vector.shape_cast %205 : vector<22xf32> to vector<22x1xf32>
    %c0_117 = arith.constant 0 : index
    %c0_118 = arith.constant 0 : index
    %207 = vector.load %arg13[%c0_117, %c0_118] : memref<1x1xf32, #tpu.memory_space<vmem>>, vector<1x1xf32>
    %208 = vector.broadcast %207 : vector<1x1xf32> to vector<22x1xf32>
    %209 = arith.addf %206, %208 : vector<22x1xf32>
    %210 = vector.extract_strided_slice %209 {offsets = [0, 0], sizes = [16, 1], strides = [1, 1]} : vector<22x1xf32> to vector<16x1xf32>
    %c0_119 = arith.constant 0 : index
    %c0_120 = arith.constant 0 : index
    %c0_121 = arith.constant 0 : index
    %211 = vector.load %arg14[%c0_119, %c0_120, %c0_121] : memref<1x16x1xf32, #tpu.memory_space<vmem>>, vector<1x16x1xf32>
    %212 = vector.shape_cast %211 : vector<1x16x1xf32> to vector<16x1xf32>
    %213 = vector.shape_cast %210 : vector<16x1xf32> to vector<1x16x1xf32>
    tpu.vector_store %arg14[%c0_119, %c0_120, %c0_121], %213 {strides = array<i32>} : memref<1x16x1xf32, #tpu.memory_space<vmem>>, vector<1x16x1xf32>,
    return
  }
  func.func @transform_0(%arg0: i32) -> (i32, i32, i32) {
    %c0_i32 = arith.constant 0 : i32
    %c0_i32_0 = arith.constant 0 : i32
    %c0_i32_1 = arith.constant 0 : i32
    return %arg0, %c0_i32, %c0_i32_0 : i32, i32, i32
  }
  func.func @transform_1(%arg0: i32) -> (i32, i32, i32) {
    %c0_i32 = arith.constant 0 : i32
    %c0_i32_0 = arith.constant 0 : i32
    %c0_i32_1 = arith.constant 0 : i32
    %c0_i32_2 = arith.constant 0 : i32
    return %c0_i32, %c0_i32_0, %c0_i32_1 : i32, i32, i32
  }
  func.func @transform_2(%arg0: i32) -> (i32, i32) {
    %c0_i32 = arith.constant 0 : i32
    %c0_i32_0 = arith.constant 0 : i32
    %c0_i32_1 = arith.constant 0 : i32
    return %c0_i32, %c0_i32_0 : i32, i32
  }
  func.func @transform_3(%arg0: i32) -> (i32, i32, i32) {
    %c0_i32 = arith.constant 0 : i32
    %c0_i32_0 = arith.constant 0 : i32
    %c0_i32_1 = arith.constant 0 : i32
    %c0_i32_2 = arith.constant 0 : i32
    return %c0_i32, %c0_i32_0, %c0_i32_1 : i32, i32, i32
  }
  func.func @transform_4(%arg0: i32) -> (i32, i32) {
    %c0_i32 = arith.constant 0 : i32
    %c0_i32_0 = arith.constant 0 : i32
    %c0_i32_1 = arith.constant 0 : i32
    return %c0_i32, %c0_i32_0 : i32, i32
  }
  func.func @transform_5(%arg0: i32) -> (i32, i32, i32) {
    %c0_i32 = arith.constant 0 : i32
    %c0_i32_0 = arith.constant 0 : i32
    %c0_i32_1 = arith.constant 0 : i32
    %c0_i32_2 = arith.constant 0 : i32
    return %c0_i32, %c0_i32_0, %c0_i32_1 : i32, i32, i32
  }
  func.func @transform_6(%arg0: i32) -> (i32, i32) {
    %c0_i32 = arith.constant 0 : i32
    %c0_i32_0 = arith.constant 0 : i32
    %c0_i32_1 = arith.constant 0 : i32
    return %c0_i32, %c0_i32_0 : i32, i32
  }
  func.func @transform_7(%arg0: i32) -> (i32, i32, i32) {
    %c0_i32 = arith.constant 0 : i32
    %c0_i32_0 = arith.constant 0 : i32
    %c0_i32_1 = arith.constant 0 : i32
    %c0_i32_2 = arith.constant 0 : i32
    return %c0_i32, %c0_i32_0, %c0_i32_1 : i32, i32, i32
  }
  func.func @transform_8(%arg0: i32) -> (i32, i32) {
    %c0_i32 = arith.constant 0 : i32
    %c0_i32_0 = arith.constant 0 : i32
    %c0_i32_1 = arith.constant 0 : i32
    return %c0_i32, %c0_i32_0 : i32, i32
  }
  func.func @transform_9(%arg0: i32) -> (i32, i32, i32) {
    %c0_i32 = arith.constant 0 : i32
    %c0_i32_0 = arith.constant 0 : i32
    %c0_i32_1 = arith.constant 0 : i32
    %c0_i32_2 = arith.constant 0 : i32
    return %c0_i32, %c0_i32_0, %c0_i32_1 : i32, i32, i32
  }
  func.func @transform_10(%arg0: i32) -> (i32, i32) {
    %c0_i32 = arith.constant 0 : i32
    %c0_i32_0 = arith.constant 0 : i32
    %c0_i32_1 = arith.constant 0 : i32
    return %c0_i32, %c0_i32_0 : i32, i32
  }
  func.func @transform_11(%arg0: i32) -> (i32, i32, i32) {
    %c0_i32 = arith.constant 0 : i32
    %c0_i32_0 = arith.constant 0 : i32
    %c0_i32_1 = arith.constant 0 : i32
    %c0_i32_2 = arith.constant 0 : i32
    return %c0_i32, %c0_i32_0, %c0_i32_1 : i32, i32, i32
  }
  func.func @transform_12(%arg0: i32) -> (i32, i32) {
    %c0_i32 = arith.constant 0 : i32
    %c0_i32_0 = arith.constant 0 : i32
    %c0_i32_1 = arith.constant 0 : i32
    return %c0_i32, %c0_i32_0 : i32, i32
  }
  func.func @transform_13(%arg0: i32) -> (i32, i32, i32) {
    %c0_i32 = arith.constant 0 : i32
    %c0_i32_0 = arith.constant 0 : i32
    %c0_i32_1 = arith.constant 0 : i32
    return %arg0, %c0_i32, %c0_i32_0 : i32, i32, i32
  }
}

</mosaic_0001>

<bundles_post_ra>
// kernel: autoencoder_filter_forward.1
= control target key start
LH: loop header
LB: loop body
LE: loop exit
PB: predicated region body
PF: predicated region fallthrough
CT: control target
= control target key end

     0   :  { %s2496_s27 = smov 0   ;;  %s3491_s0 = inlined_call_operand.vmem [shape: f32[2,40,1], index: 0, kind: input, shape index: {}]   ;;  %s3492_s1 = inlined_call_operand.vmem [shape: f32[4,1,16], index: 1, kind: input, shape index: {}]   ;;  %s3493_s2 = inlined_call_operand.vmem [shape: f32[1,16], index: 2, kind: input, shape index: {}]   ;;  %s3494_s3 = inlined_call_operand.vmem [shape: f32[4,16,64], index: 3, kind: input, shape index: {}]   ;;  %s3495_s4 = inlined_call_operand.vmem [shape: f32[1,64], index: 4, kind: input, shape index: {}]   ;;  %s3496_s5 = inlined_call_operand.vmem [shape: f32[4,64,256], index: 5, kind: input, shape index: {}]   ;;  %s3497_s6 = inlined_call_operand.vmem [shape: f32[1,256], index: 6, kind: input, shape index: {}]   ;;  %s3498_s7 = inlined_call_operand.vmem [shape: f32[4,256,64], index: 7, kind: input, shape index: {}]   ;;  %s3499_s8 = inlined_call_operand.vmem [shape: f32[1,64], index: 8, kind: input, shape index: {}]   ;;  %s3500_s9 = inlined_call_operand.vmem [shape: f32[4,64,16], index: 9, kind: input, shape index: {}]   ;;  %s3501_s10 = inlined_call_operand.vmem [shape: f32[1,16], index: 10, kind: input, shape index: {}]   ;;  %s3502_s11 = inlined_call_operand.vmem [shape: f32[4,1,16], index: 11, kind: input, shape index: {}]   ;;  %s3503_s12 = inlined_call_operand.<no memory space> [shape: f32[1,1], index: 12, kind: input, shape index: {}]   ;;  %s3504_s13 = inlined_call_operand.vmem [shape: f32[2,16,1], index: 13, kind: output, shape index: {}]  }
   0x1   :  { %v18_v0 = vstv %s3503_s12 }
   0x2   :  { %19 = vst [vmem:[#allocation2] sm:$0x1] %v18_v0 }
   0x3 LB: > { %s2135_s28 = sadd.s32 4294967295, %s2419_s27   ;;  %p2139_p0 = scmp.ge.s32.totalorder %s2419_s27, 1  ;;  %s2419_s27 = sphi %s2496_s27, %s25_s27  }
   0x4   : > { %p389_p1 = scmp.lt.s32.totalorder %s2419_s27, 3 }
   0x6   : > { %p390_p2 = pnand %p2139_p0, %p389_p1 }
   0x7   : > { %p433_p3 = scmp.lt.s32.totalorder (!%p390_p2), %s2135_s28, 1 }
   0x8   : > { %393 = sbr.rel (%p390_p2) target bundleno = 949 (0x3b5), region = 72 }
   0xd   : > { %v2421_v1 = vmov 0   ;;  %s3506_s28 = smov (!%p433_p3, %s2135_s28), 1  ;;  %v633_v5 = vld [vmem:[%s3494_s3 + $0x8] sm:$0xff]  ;;  %v632_v6 = vld [vmem:[%s3494_s3] sm:$0xff]  ;;  %v2147_v7 = vld [vmem:[%s3494_s3 + $0x18] sm:$0xff]  ;;  %v2422_v8 = vmov 0.0   ;;  %v606_v26 = vlaneseq }
   0xe   : > { %2398 = vset.pattern.permute.xlu0 %v2421_v1  ;;  %2399 = vset.pattern.permute.xlu1 %v2421_v1  ;;  %s2387_s12 = smul.u32 40, %s3506_s28  ;;  %v2156_v9 = vld [vmem:[%s3494_s3 + $0x28] sm:$0xff]  ;;  %v2163_v10 = vld [vmem:[%s3494_s3 + $0x38] sm:$0xff]  ;;  %v2146_v11 = vld [vmem:[%s3494_s3 + $0x10] sm:$0xff]  ;;  %vm502_vm0 = vcmask 1046528   ;;  %vm537_vm1 = vcmask 1045504  }
   0xf   : > { %718 = vmatpush.msra.mxu1 %v633_v5  ;;  %676 = vmatpush.msra.mxu0 %v2147_v7  ;;  %v2155_v12 = vld [vmem:[%s3494_s3 + $0x20] sm:$0xff]  ;;  %v2162_v13 = vld [vmem:[%s3494_s3 + $0x30] sm:$0xff]  ;;  %v2547_v39 = vshrl.u32 %v606_v26, 7  ;;  %v898_v45 = vld [vmem:[%s3496_s5 + $0x78] sm:$0xff]  ;;  %vm572_vm2 = vcmask 1044480   ;;  %vm651_vm4 = vcmask 130048  }
  0x10   : > { %s437_s14 = scalar_lea.vmem %s3491_s0, %s2387_s12  ;;  %772 = vmatpush.msra.mxu2 %v2156_v9  ;;  %831 = vmatpush.msra.mxu3 %v2163_v10  ;;  %v2400_v16 = vld [vmem:[%s3492_s1 + $0x1] ss:$0 sm:$0xff]  ;;  %v2401_v17 = vld [vmem:[%s3492_s1 + $0x2] ss:$0 sm:$0xff]  ;;  %v2402_v19 = vld [vmem:[%s3492_s1 + $0x3] ss:$0 sm:$0xff] }
  0x11   : > { %v444_v2 = vld [vmem:[%s437_s14 + $0x8] sm:$0xff]  ;;  %v446_v3 = vld [vmem:[%s437_s14 + $0x18] sm:$0xff]  ;;  %v445_v4 = vld [vmem:[%s437_s14 + $0x10] sm:$0xff]  ;;  %719 = vmatpush.msra.mxu1 %v632_v6  ;;  %677 = vmatpush.msra.mxu0 %v2146_v11  ;;  %v2577_v60 = vadd.s32 8, %v2547_v39  ;;  %v2581_v1 = vadd.s32 16, %v2547_v39  ;;  %v2590_v5 = vrot.slane %v2422_v8, 3 }
  0x12   : > { %456 = vperm.xlu0 %2398, %v444_v2   ;;  %466 = vperm.xlu1 %2399, %v446_v3   ;;  %v2403_v24 = vld [vmem:[%s3492_s1] ss:$0 sm:$0xff]  ;;  %v897_v44 = vld [vmem:[%s3496_s5 + $0x70] sm:$0xff]  ;;  %v2184_v49 = vld [vmem:[%s3496_s5 + $0xf8] sm:$0xff]  ;;  %v2584_v3 = vrot.slane %v2422_v8, 1  ;;  %vm927_vm6 = vcmask 523264  }
  0x13   : > { %720 = vmatmul.f32.vlgmr.msra.gmra.mxu1 %v2422_v8  ;;  %773 = vmatpush.msra.mxu2 %v2155_v12  ;;  %v2183_v46 = vld [vmem:[%s3496_s5 + $0xf0] sm:$0xff]  ;;  %v895_v50 = vld [vmem:[%s3496_s5 + $0x60] sm:$0xff]  ;;  %v896_v51 = vld [vmem:[%s3496_s5 + $0x68] sm:$0xff]  ;;  %vm613_vm3 = vcmp.ge.s32.totalorder %v2577_v60, 9  ;;  %vm619_vm5 = vcmp.lt.s32.totalorder %v2581_v1, 22  ;;  %vm870_vm7 = vcmp.lt.s32.totalorder %v2581_v1, 19 }
  0x14   : > { %832 = vmatpush.msra.mxu3 %v2162_v13  ;;  %944 = vmatpush.msrb.mxu0 %v2183_v46  ;;  %v2404_v57 = vld [vmem:[%s3493_s2] ss:$0 sm:$0xff]  ;;  %v2182_v26 = vld [vmem:[%s3496_s5 + $0xe8] sm:$0xff]  ;;  %v886_v46 = vld [vmem:[%s3496_s5 + $0x18] sm:$0xff]  ;;  %vm1756_vm8 = vcmp.ge.s32.totalorder %v2547_v39, 6  ;;  %vm1988_vm9 = vcmp.ge.s32.totalorder %v2547_v39, 3 }
  0x15   : > { %1010 = vmatpush.msrb.mxu2 %v897_v44  ;;  %973 = vmatpush.msrb.mxu1 %v2184_v49  ;;  %v2174_v44 = vld [vmem:[%s3496_s5 + $0xa8] sm:$0xff]  ;;  %v2171_v49 = vld [vmem:[%s3496_s5 + $0x90] sm:$0xff]  ;;  %s2386_s25 = sshll.u32 %s3506_s28, 4  ;;  %vm2077_vm10 = vcmask 7168  }
  0x16   : > { %1039 = vmatpush.msrb.mxu3 %v898_v45  ;;  %v885_v45 = vld [vmem:[%s3496_s5 + $0x10] sm:$0xff]  ;;  %s442_s29 = scalar_lea.vmem %s3504_s13, %s2386_s25 }
  0x17   : > { %1011 = vmatpush.msrb.mxu2 %v895_v50  ;;  %974 = vmatpush.msrb.mxu1 %v2182_v26  ;;  %v2172_v50 = vld [vmem:[%s3496_s5 + $0x98] sm:$0xff]  ;;  %v2201_v26 = vld [vmem:[%s3496_s5 + $0x120] sm:$0xff] }
  0x18   : > { %1040 = vmatpush.msrb.mxu3 %v896_v51  ;;  %v2169_v51 = vld [vmem:[%s3496_s5 + $0x80] sm:$0xff] }
  0x1a   : > { %461 = vperm.xlu0 %2398, %v445_v4   ;;  %v2587_v4 = vrot.slane %v2422_v8, 2 }
  0x84   : > { %v457_v14 = vpop.permute.xlu0 %456  ;;  %v467_v15 = vpop.permute.xlu1 %466 }
  0x85   : > { %v495_v18 = vmul.f32 %v2400_v16, %v467_v15  ;;  %v493_v20 = vmul.f32 %v2400_v16, %v457_v14  ;;  %v530_v21 = vmul.f32 %v2401_v17, %v467_v15  ;;  %v528_v22 = vmul.f32 %v2401_v17, %v457_v14 }
  0x86   : > { %v565_v23 = vmul.f32 %v2402_v19, %v467_v15  ;;  %v563_v31 = vmul.f32 %v2402_v19, %v457_v14  ;;  %v478_v37 = vmul.f32 %v2403_v24, %v457_v14 }
  0x87   : > { %v508_v27 = vrot.slane %v495_v18, 1  ;;  %v504_v32 = vrot.slane %v493_v20, 1  ;;  %v543_v33 = vrot.slane %v530_v21, 2  ;;  %v539_v36 = vrot.slane %v528_v22, 2 }
  0x88   : > { %v578_v40 = vrot.slane %v565_v23, 3  ;;  %v574_v52 = vrot.slane %v563_v31, 3  ;;  %v2180_v31 = vld [vmem:[%s3496_s5 + $0xd8] sm:$0xff] }
  0x89   : > { %975 = vmatpush.msrb.mxu1 %v2180_v31  ;;  %v2222_v31 = vld [vmem:[%s3496_s5 + $0x188] sm:$0xff] }
  0x8c   : > { %v462_v25 = vpop.permute.xlu0 %461 }
  0x8d   : > { %v494_v28 = vmul.f32 %v2400_v16, %v462_v25  ;;  %v529_v29 = vmul.f32 %v2401_v17, %v462_v25  ;;  %v564_v30 = vmul.f32 %v2402_v19, %v462_v25  ;;  %v479_v38 = vmul.f32 %v2403_v24, %v462_v25  ;;  %v2181_v25 = vld [vmem:[%s3496_s5 + $0xe0] sm:$0xff] }
  0x8e   : > { %945 = vmatpush.msrb.mxu0 %v2181_v25 }
  0x8f   : > { %v506_v34 = vrot.slane %v494_v28, 1  ;;  %v541_v35 = vrot.slane %v529_v29, 2  ;;  %v576_v43 = vrot.slane %v564_v30, 3  ;;  %v894_v28 = vld [vmem:[%s3496_s5 + $0x58] sm:$0xff]  ;;  %v2179_v30 = vld [vmem:[%s3496_s5 + $0xd0] sm:$0xff] }
  0x90   : > { %1041 = vmatpush.msrb.mxu3 %v894_v28  ;;  %v721_v29 = vpop.f32.mrf.mxu1  ;;  %946 = vmatpush.msrb.mxu0 %v2179_v30  ;;  %v2221_v30 = vld [vmem:[%s3496_s5 + $0x180] sm:$0xff] }
  0x91   : > { %v507_v41 = vsel %vm502_vm0, %v504_v32, %v506_v34  ;;  %v509_v42 = vsel %vm502_vm0, %v506_v34, %v508_v27  ;;  %v542_v53 = vsel %vm537_vm1, %v539_v36, %v541_v35  ;;  %v544_v54 = vsel %vm537_vm1, %v541_v35, %v543_v33  ;;  %v893_v27 = vld [vmem:[%s3496_s5 + $0x50] sm:$0xff]  ;;  %v891_v32 = vld [vmem:[%s3496_s5 + $0x40] sm:$0xff]  ;;  %v892_v33 = vld [vmem:[%s3496_s5 + $0x48] sm:$0xff] }
  0x92   : > { %v518_v47 = vadd.f32 %v507_v41, %v478_v37  ;;  %v519_v48 = vadd.f32 %v509_v42, %v479_v38  ;;  %v577_v58 = vsel %vm572_vm2, %v574_v52, %v576_v43  ;;  %v579_v59 = vsel %vm572_vm2, %v576_v43, %v578_v40  ;;  %1012 = vmatpush.msrb.mxu2 %v893_v27  ;;  %v2177_v34 = vld [vmem:[%s3496_s5 + $0xc0] sm:$0xff]  ;;  %v2178_v35 = vld [vmem:[%s3496_s5 + $0xc8] sm:$0xff]  ;;  %v889_v36 = vld [vmem:[%s3496_s5 + $0x30] sm:$0xff] }
  0x93   : > { %1042 = vmatpush.msrb.mxu3 %v892_v33  ;;  %947 = vmatpush.msrb.mxu0 %v2177_v34  ;;  %v890_v37 = vld [vmem:[%s3496_s5 + $0x38] sm:$0xff]  ;;  %v2175_v38 = vld [vmem:[%s3496_s5 + $0xb0] sm:$0xff]  ;;  %v887_v41 = vld [vmem:[%s3496_s5 + $0x20] sm:$0xff] }
  0x94   : > { %v553_v55 = vadd.f32 %v542_v53, %v518_v47  ;;  %v554_v56 = vadd.f32 %v544_v54, %v519_v48  ;;  %1013 = vmatpush.msrb.mxu2 %v891_v32  ;;  %976 = vmatpush.msrb.mxu1 %v2178_v35  ;;  %v2176_v40 = vld [vmem:[%s3496_s5 + $0xb8] sm:$0xff]  ;;  %v888_v42 = vld [vmem:[%s3496_s5 + $0x28] sm:$0xff]  ;;  %v2173_v43 = vld [vmem:[%s3496_s5 + $0xa0] sm:$0xff] }
  0x95   : > { %1043 = vmatpush.msrb.mxu3 %v890_v37  ;;  %948 = vmatpush.msrb.mxu0 %v2175_v38  ;;  %v883_v47 = vld [vmem:[%s3496_s5] sm:$0xff]  ;;  %v884_v48 = vld [vmem:[%s3496_s5 + $0x8] sm:$0xff]  ;;  %v2235_v54 = vld [vmem:[%s3496_s5 + $0x1f0] sm:$0xff] }
  0x96   : > { %v588_v61 = vadd.f32 %v577_v58, %v553_v55  ;;  %v589_v62 = vadd.f32 %v579_v59, %v554_v56  ;;  %1014 = vmatpush.msrb.mxu2 %v889_v36  ;;  %977 = vmatpush.msrb.mxu1 %v2176_v40  ;;  %v2170_v52 = vld [vmem:[%s3496_s5 + $0x88] sm:$0xff]  ;;  %v2236_v55 = vld [vmem:[%s3496_s5 + $0x1f8] sm:$0xff]  ;;  %v2211_v56 = vld [vmem:[%s3496_s5 + $0x170] sm:$0xff] }
  0x97   : > { %1044 = vmatpush.msrb.mxu3 %v888_v42  ;;  %949 = vmatpush.msrb.mxu0 %v2173_v43  ;;  %v2212_v58 = vld [vmem:[%s3496_s5 + $0x178] sm:$0xff]  ;;  %v2233_v59 = vld [vmem:[%s3496_s5 + $0x1e0] sm:$0xff]  ;;  %v2202_v27 = vld [vmem:[%s3496_s5 + $0x128] sm:$0xff] }
  0x98   : > { %v597_v63 = vadd.f32 %v2404_v57, %v588_v61  ;;  %v598_v0 = vadd.f32 %v2404_v57, %v589_v62  ;;  %1015 = vmatpush.msrb.mxu2 %v887_v41  ;;  %978 = vmatpush.msrb.mxu1 %v2174_v44  ;;  %v2234_v61 = vld [vmem:[%s3496_s5 + $0x1e8] sm:$0xff]  ;;  %v2209_v62 = vld [vmem:[%s3496_s5 + $0x160] sm:$0xff]  ;;  %v2199_v38 = vld [vmem:[%s3496_s5 + $0x110] sm:$0xff] }
  0x99   : > { %1045 = vmatpush.msrb.mxu3 %v886_v46  ;;  %950 = vmatpush.msrb.mxu0 %v2171_v49  ;;  %v2405_v34 = vld [vmem:[%s3495_s4] ss:$0 sm:$0xff]  ;;  %v2200_v40 = vld [vmem:[%s3496_s5 + $0x118] sm:$0xff]  ;;  %v2198_v42 = vld [vmem:[%s3496_s5 + $0x108] sm:$0xff] }
  0x9a   : > { %v602_v2 = vmax.f32 %v597_v63, 0.0  ;;  %v603_v7 = vmax.f32 %v598_v0, 0.0  ;;  %1016 = vmatpush.msrb.mxu2 %v885_v45  ;;  %979 = vmatpush.msrb.mxu1 %v2172_v50  ;;  %v2210_v63 = vld [vmem:[%s3496_s5 + $0x168] sm:$0xff]  ;;  %v2231_v0 = vld [vmem:[%s3496_s5 + $0x1d0] sm:$0xff]  ;;  %v2197_v41 = vld [vmem:[%s3496_s5 + $0x100] sm:$0xff] }
  0x9b   : > { %1046 = vmatpush.msrb.mxu3 %v884_v48  ;;  %951 = vmatpush.msrb.mxu0 %v2169_v51 }
  0x9c   : > { %v628_v6 = vsel %vm613_vm3, %v602_v2, 0.0  ;;  %v629_v15 = vsel %vm619_vm5, %v603_v7, 0.0  ;;  %1017 = vmatpush.msrb.mxu2 %v883_v47  ;;  %980 = vmatpush.msrb.mxu1 %v2170_v52  ;;  %v2232_v2 = vld [vmem:[%s3496_s5 + $0x1d8] sm:$0xff] }
  0x9d   : > { %2153 = vmatmul.msk.f32.gmra.mxu1 %vm651_vm4, %v628_v6  ;;  %v643_v9 = vrot.slane %v628_v6, 1  ;;  %v740_v10 = vrot.slane %v628_v6, 2  ;;  %v799_v11 = vrot.slane %v628_v6, 3  ;;  %v645_v16 = vrot.slane %v629_v15, 1  ;;  %v2207_v6 = vld [vmem:[%s3496_s5 + $0x150] sm:$0xff]  ;;  %v2208_v7 = vld [vmem:[%s3496_s5 + $0x158] sm:$0xff] }
  0x9e   : > { %v742_v17 = vrot.slane %v629_v15, 2  ;;  %v801_v18 = vrot.slane %v629_v15, 3  ;;  %1132 = vmatpush.msra.mxu1 %v2212_v58 }
  0x9f   : > { %v644_v12 = vsel %vm502_vm0, %v2584_v3, %v643_v9  ;;  %v741_v13 = vsel %vm537_vm1, %v2587_v4, %v740_v10  ;;  %v800_v14 = vsel %vm572_vm2, %v2590_v5, %v799_v11  ;;  %v646_v19 = vsel %vm502_vm0, %v643_v9, %v645_v16  ;;  %v2229_v9 = vld [vmem:[%s3496_s5 + $0x1c0] sm:$0xff] }
  0xa0   : > { %2148 = vmatmul.msk.f32.vlgmr.msra.gmra.mxu0 %vm651_vm4, %v644_v12  ;;  %2157 = vmatmul.msk.f32.vlgmr.msra.gmra.mxu2 %vm651_vm4, %v741_v13  ;;  %v743_v20 = vsel %vm537_vm1, %v740_v10, %v742_v17  ;;  %v802_v21 = vsel %vm572_vm2, %v799_v11, %v801_v18  ;;  %v648_v22 = vsel %vm502_vm0, %v645_v16, %v2584_v3  ;;  %v2230_v10 = vld [vmem:[%s3496_s5 + $0x1c8] sm:$0xff]  ;;  %v2205_v11 = vld [vmem:[%s3496_s5 + $0x140] sm:$0xff] }
  0xa1   : > { %2164 = vmatmul.msk.f32.vlgmr.msra.gmra.mxu3 %vm651_vm4, %v800_v14  ;;  %v745_v23 = vsel %vm537_vm1, %v742_v17, %v2587_v4  ;;  %v804_v24 = vsel %vm572_vm2, %v801_v18, %v2590_v5  ;;  %1203 = vmatpush.msra.mxu2 %v2235_v54  ;;  %v2206_v12 = vld [vmem:[%s3496_s5 + $0x148] sm:$0xff]  ;;  %v2227_v14 = vld [vmem:[%s3496_s5 + $0x1b0] sm:$0xff] }
  0xa2   : > { %1232 = vmatpush.msra.mxu3 %v2236_v55  ;;  %1103 = vmatpush.msra.mxu0 %v2211_v56 }
  0xa3   : > { %1204 = vmatpush.msra.mxu2 %v2233_v59  ;;  %1133 = vmatpush.msra.mxu1 %v2210_v63 }
  0xa4   : > { %1233 = vmatpush.msra.mxu3 %v2234_v61  ;;  %1104 = vmatpush.msra.mxu0 %v2209_v62 }
  0xa5   : > { %2154 = vmatmul.msk.f32.gmra.mxu1 %vm651_vm4, %v629_v15  ;;  %1205 = vmatpush.msra.mxu2 %v2231_v0  ;;  %v2228_v15 = vld [vmem:[%s3496_s5 + $0x1b8] sm:$0xff] }
  0xa6   : > { %1234 = vmatpush.msra.mxu3 %v2232_v2  ;;  %1105 = vmatpush.msra.mxu0 %v2207_v6 }
  0xa7   : > { %1134 = vmatpush.msra.mxu1 %v2208_v7  ;;  %1206 = vmatpush.msra.mxu2 %v2229_v9 }
  0xa8   : > { %2149 = vmatmul.msk.f32.gmra.mxu0 %vm651_vm4, %v646_v19  ;;  %2158 = vmatmul.msk.f32.gmra.mxu2 %vm651_vm4, %v743_v20  ;;  %v2203_v19 = vld [vmem:[%s3496_s5 + $0x130] sm:$0xff]  ;;  %v2204_v20 = vld [vmem:[%s3496_s5 + $0x138] sm:$0xff] }
  0xa9   : > { %2165 = vmatmul.msk.f32.gmra.mxu3 %vm651_vm4, %v802_v21  ;;  %1106 = vmatpush.msra.mxu0 %v2205_v11  ;;  %v2225_v21 = vld [vmem:[%s3496_s5 + $0x1a0] sm:$0xff] }
  0xaa   : > { %1235 = vmatpush.msra.mxu3 %v2230_v10  ;;  %1135 = vmatpush.msra.mxu1 %v2206_v12 }
  0xab   : > { %1207 = vmatpush.msra.mxu2 %v2227_v14  ;;  %1107 = vmatpush.msra.mxu0 %v2203_v19  ;;  %v1330_v19 = vld [vmem:[%s3498_s7 + $0xf8] sm:$0xff] }
  0xac   : > { %1236 = vmatpush.msra.mxu3 %v2228_v15  ;;  %1136 = vmatpush.msra.mxu1 %v2204_v20  ;;  %v1313_v20 = vld [vmem:[%s3498_s7 + $0x70] sm:$0xff] }
  0xad   : > { %729 = vmatmul.f32.gmra.mxu1 %v2422_v8  ;;  %1208 = vmatpush.msra.mxu2 %v2225_v21  ;;  %v1329_v21 = vld [vmem:[%s3498_s7 + $0xf0] sm:$0xff] }
  0xae   : > { %1108 = vmatpush.msra.mxu0 %v2201_v26  ;;  %1137 = vmatpush.msra.mxu1 %v2202_v27  ;;  %v1310_v26 = vld [vmem:[%s3498_s7 + $0x58] sm:$0xff] }
  0xaf   : > { %v1326_v27 = vld [vmem:[%s3498_s7 + $0xd8] sm:$0xff] }
  0xb0   : > { %2150 = vmatmul.msk.f32.gmra.mxu0 %vm651_vm4, %v648_v22  ;;  %2159 = vmatmul.msk.f32.gmra.mxu2 %vm651_vm4, %v745_v23  ;;  %v2226_v22 = vld [vmem:[%s3496_s5 + $0x1a8] sm:$0xff]  ;;  %v2223_v23 = vld [vmem:[%s3496_s5 + $0x190] sm:$0xff] }
  0xb1   : > { %2166 = vmatmul.msk.f32.gmra.mxu3 %vm651_vm4, %v804_v24  ;;  %v2224_v24 = vld [vmem:[%s3496_s5 + $0x198] sm:$0xff]  ;;  %1209 = vmatpush.msra.mxu2 %v2223_v23  ;;  %v1328_v23 = vld [vmem:[%s3498_s7 + $0xe8] sm:$0xff] }
  0xb2   : > { %1237 = vmatpush.msra.mxu3 %v2226_v22  ;;  %1109 = vmatpush.msra.mxu0 %v2199_v38  ;;  %v1312_v22 = vld [vmem:[%s3498_s7 + $0x68] sm:$0xff] }
  0xb3   : > { %1210 = vmatpush.msra.mxu2 %v2221_v30  ;;  %1138 = vmatpush.msra.mxu1 %v2200_v40  ;;  %v2260_v30 = vld [vmem:[%s3498_s7 + $0x178] sm:$0xff]  ;;  %v2258_v38 = vld [vmem:[%s3498_s7 + $0x168] sm:$0xff] }
  0xb4   : > { %1238 = vmatpush.msra.mxu3 %v2224_v24  ;;  %1110 = vmatpush.msra.mxu0 %v2197_v41  ;;  %v1311_v24 = vld [vmem:[%s3498_s7 + $0x60] sm:$0xff]  ;;  %v2274_v40 = vld [vmem:[%s3498_s7 + $0x1e8] sm:$0xff]  ;;  %v1306_v41 = vld [vmem:[%s3498_s7 + $0x38] sm:$0xff] }
  0xb5   : > { %732 = vmatmul.f32.gmra.mxu1 %v2422_v8 }
  0xb6   : > { %1239 = vmatpush.msra.mxu3 %v2222_v31  ;;  %1139 = vmatpush.msra.mxu1 %v2198_v42  ;;  %v2276_v31 = vld [vmem:[%s3498_s7 + $0x1f8] sm:$0xff] }
  0xb7   : > { %v1322_v42 = vld [vmem:[%s3498_s7 + $0xb8] sm:$0xff] }
  0xb8   : > { %2160 = vmatmul.msk.f32.gmra.mxu2 %vm651_vm4, %v2587_v4  ;;  %2151 = vmatmul.msk.f32.gmra.mxu0 %vm651_vm4, %v2584_v3 }
  0xb9   : > { %2167 = vmatmul.msk.f32.gmra.mxu3 %vm651_vm4, %v2590_v5 }
  0xc0   : > { %2161 = vmatmul.msk.f32.gmra.mxu2 %vm651_vm4, %v2587_v4  ;;  %2152 = vmatmul.msk.f32.gmra.mxu0 %vm651_vm4, %v2584_v3 }
  0xc1   : > { %2168 = vmatmul.msk.f32.gmra.mxu3 %vm651_vm4, %v2590_v5 }
  0xc8   : > { %1018 = vmatmul.f32.vlgmr.msrb.gmra.mxu2 %v2422_v8 }
  0xc9   : > { %1047 = vmatmul.f32.vlgmr.msrb.gmra.mxu3 %v2422_v8 }
  0xca   : > { %1481 = vmatpush.msrb.mxu3 %v1330_v19 }
  0xcc   : > { %1482 = vmatpush.msrb.mxu3 %v1329_v21  ;;  %v2266_v21 = vld [vmem:[%s3498_s7 + $0x1a8] sm:$0xff] }
  0xce   : > { %1483 = vmatpush.msrb.mxu3 %v1328_v23  ;;  %v2342_v23 = vld [vmem:[%s3498_s7 + $0x3f8] sm:$0xff] }
 0x11a   : > { %v724_v53 = vpop.f32.mrf.mxu1 }
 0x11d   : > { %v679_v57 = vpop.f32.mrf.mxu0 }
 0x122   : > { %v727_v13 = vpop.f32.mrf.mxu1 }
 0x123   : > { %v775_v16 = vpop.f32.mrf.mxu2 }
 0x124   : > { %v834_v17 = vpop.f32.mrf.mxu3 }
 0x125   : > { %v682_v18 = vpop.f32.mrf.mxu0 }
 0x126   : > { %v725_v25 = vadd.f32 %v724_v53, %v682_v18  ;;  %v1314_v18 = vld [vmem:[%s3498_s7 + $0x78] sm:$0xff] }
 0x127   : > { %1452 = vmatpush.msrb.mxu2 %v1314_v18 }
 0x129   : > { %1453 = vmatpush.msrb.mxu2 %v1313_v20  ;;  %v2250_v20 = vld [vmem:[%s3498_s7 + $0x128] sm:$0xff] }
 0x12a   : > { %v730_v28 = vpop.f32.mrf.mxu1 }
 0x12b   : > { %v778_v29 = vpop.f32.mrf.mxu2  ;;  %1454 = vmatpush.msrb.mxu2 %v1312_v22  ;;  %v1309_v28 = vld [vmem:[%s3498_s7 + $0x50] sm:$0xff]  ;;  %v2326_v22 = vld [vmem:[%s3498_s7 + $0x378] sm:$0xff] }
 0x12c   : > { %v791_v32 = vadd.f32 %v778_v29, %v725_v25  ;;  %v837_v33 = vpop.f32.mrf.mxu3  ;;  %v1327_v25 = vld [vmem:[%s3498_s7 + $0xe0] sm:$0xff]  ;;  %v1325_v29 = vld [vmem:[%s3498_s7 + $0xd0] sm:$0xff] }
 0x12d   : > { %v685_v35 = vpop.f32.mrf.mxu0  ;;  %1455 = vmatpush.msrb.mxu2 %v1311_v24  ;;  %1484 = vmatpush.msrb.mxu3 %v1327_v25  ;;  %v2249_v24 = vld [vmem:[%s3498_s7 + $0x120] sm:$0xff] }
 0x12e   : > { %v850_v36 = vadd.f32 %v837_v33, %v791_v32  ;;  %v728_v44 = vadd.f32 %v727_v13, %v685_v35  ;;  %v1308_v32 = vld [vmem:[%s3498_s7 + $0x48] sm:$0xff]  ;;  %v2275_v35 = vld [vmem:[%s3498_s7 + $0x1f0] sm:$0xff]  ;;  %v2265_v25 = vld [vmem:[%s3498_s7 + $0x1a0] sm:$0xff] }
 0x12f   : > { %1456 = vmatpush.msrb.mxu2 %v1310_v26  ;;  %1485 = vmatpush.msrb.mxu3 %v1326_v27  ;;  %v1324_v33 = vld [vmem:[%s3498_s7 + $0xc8] sm:$0xff]  ;;  %v2325_v26 = vld [vmem:[%s3498_s7 + $0x370] sm:$0xff] }
 0x130   : > { %v859_v37 = vadd.f32 %v2405_v34, %v850_v36  ;;  %v1307_v36 = vld [vmem:[%s3498_s7 + $0x40] sm:$0xff]  ;;  %v2341_v27 = vld [vmem:[%s3498_s7 + $0x3f0] sm:$0xff] }
 0x131   : > { %1457 = vmatpush.msrb.mxu2 %v1309_v28  ;;  %1486 = vmatpush.msrb.mxu3 %v1325_v29  ;;  %v2248_v28 = vld [vmem:[%s3498_s7 + $0x118] sm:$0xff] }
 0x132   : > { %v864_v43 = vmax.f32 %v859_v37, 0.0  ;;  %v733_v45 = vpop.f32.mrf.mxu1  ;;  %v1323_v37 = vld [vmem:[%s3498_s7 + $0xc0] sm:$0xff]  ;;  %v2264_v29 = vld [vmem:[%s3498_s7 + $0x198] sm:$0xff] }
 0x133   : > { %v781_v46 = vpop.f32.mrf.mxu2  ;;  %1458 = vmatpush.msrb.mxu2 %v1308_v32  ;;  %1487 = vmatpush.msrb.mxu3 %v1324_v33  ;;  %v1305_v45 = vld [vmem:[%s3498_s7 + $0x30] sm:$0xff] }
 0x134   : > { %v879_v47 = vsel %vm613_vm3, %v864_v43, 0.0  ;;  %v792_v48 = vadd.f32 %v781_v46, %v728_v44  ;;  %v840_v49 = vpop.f32.mrf.mxu3  ;;  %v2257_v43 = vld [vmem:[%s3498_s7 + $0x160] sm:$0xff]  ;;  %v1321_v46 = vld [vmem:[%s3498_s7 + $0xb0] sm:$0xff] }
 0x135   : > { %2193 = vmatmul.msk.f32.gmra.mxu2 %vm927_vm6, %v879_v47  ;;  %2195 = vmatmul.msk.f32.gmra.mxu3 %vm927_vm6, %v879_v47  ;;  %v921_v50 = vrot.slane %v879_v47, 1  ;;  %v688_v51 = vpop.f32.mrf.mxu0  ;;  %v1179_v2 = vrot.slane %v879_v47, 3  ;;  %v1079_v9 = vrot.slane %v879_v47, 2  ;;  %v2273_v44 = vld [vmem:[%s3498_s7 + $0x1e0] sm:$0xff]  ;;  %v2256_v47 = vld [vmem:[%s3498_s7 + $0x158] sm:$0xff]  ;;  %v2247_v32 = vld [vmem:[%s3498_s7 + $0x110] sm:$0xff] }
 0x136   : > { %v851_v52 = vadd.f32 %v840_v49, %v792_v48  ;;  %1459 = vmatpush.msrb.mxu2 %v1307_v36  ;;  %1488 = vmatpush.msrb.mxu3 %v1323_v37  ;;  %v2272_v48 = vld [vmem:[%s3498_s7 + $0x1d8] sm:$0xff]  ;;  %v1304_v49 = vld [vmem:[%s3498_s7 + $0x28] sm:$0xff]  ;;  %v2255_v51 = vld [vmem:[%s3498_s7 + $0x150] sm:$0xff] }
 0x137   : > { %v922_v53 = vsel %vm502_vm0, %v2584_v3, %v921_v50  ;;  %v1180_v6 = vsel %vm572_vm2, %v2590_v5, %v1179_v2  ;;  %v1080_v11 = vsel %vm537_vm1, %v2587_v4, %v1079_v9  ;;  %v2263_v33 = vld [vmem:[%s3498_s7 + $0x190] sm:$0xff]  ;;  %v2323_v36 = vld [vmem:[%s3498_s7 + $0x360] sm:$0xff] }
 0x138   : > { %v860_v54 = vadd.f32 %v2405_v34, %v851_v52  ;;  %2185 = vmatmul.msk.f32.vlgmr.msrb.gmra.mxu0 %vm927_vm6, %v922_v53  ;;  %2189 = vmatmul.msk.f32.vlgmr.msrb.gmra.mxu1 %vm927_vm6, %v922_v53  ;;  %v2259_v34 = vld [vmem:[%s3498_s7 + $0x170] sm:$0xff]  ;;  %v2339_v37 = vld [vmem:[%s3498_s7 + $0x3e0] sm:$0xff] }
 0x139   : > { %1394 = vmatpush.msrb.mxu0 %v2260_v30  ;;  %1423 = vmatpush.msrb.mxu1 %v2276_v31  ;;  %v2271_v52 = vld [vmem:[%s3498_s7 + $0x1d0] sm:$0xff]  ;;  %v2324_v30 = vld [vmem:[%s3498_s7 + $0x368] sm:$0xff] }
 0x13a   : > { %v865_v55 = vmax.f32 %v860_v54, 0.0  ;;  %1460 = vmatpush.msrb.mxu2 %v1306_v41  ;;  %1489 = vmatpush.msrb.mxu3 %v1322_v42  ;;  %v2340_v31 = vld [vmem:[%s3498_s7 + $0x3e8] sm:$0xff]  ;;  %v2322_v41 = vld [vmem:[%s3498_s7 + $0x358] sm:$0xff] }
 0x13b   : > { %v784_v56 = vpop.f32.mrf.mxu2  ;;  %1395 = vmatpush.msrb.mxu0 %v2259_v34  ;;  %1424 = vmatpush.msrb.mxu1 %v2275_v35  ;;  %v2338_v42 = vld [vmem:[%s3498_s7 + $0x3d8] sm:$0xff] }
 0x13c   : > { %v880_v57 = vsel %vm870_vm7, %v865_v55, 0.0  ;;  %v843_v58 = vpop.f32.mrf.mxu3  ;;  %1461 = vmatpush.msrb.mxu2 %v1305_v45  ;;  %1490 = vmatpush.msrb.mxu3 %v1321_v46  ;;  %v1303_v55 = vld [vmem:[%s3498_s7 + $0x20] sm:$0xff] }
 0x13d   : > { %2194 = vmatmul.msk.f32.gmra.mxu2 %vm927_vm6, %v880_v57  ;;  %2196 = vmatmul.msk.f32.gmra.mxu3 %vm927_vm6, %v880_v57  ;;  %v923_v59 = vrot.slane %v880_v57, 1  ;;  %v691_v61 = vpop.f32.mrf.mxu0  ;;  %v1181_v7 = vrot.slane %v880_v57, 3  ;;  %v1081_v12 = vrot.slane %v880_v57, 2  ;;  %v1319_v56 = vld [vmem:[%s3498_s7 + $0xa0] sm:$0xff]  ;;  %v2254_v57 = vld [vmem:[%s3498_s7 + $0x148] sm:$0xff] }
 0x13e   : > { %1396 = vmatpush.msrb.mxu0 %v2258_v38  ;;  %1425 = vmatpush.msrb.mxu1 %v2274_v40  ;;  %v2270_v58 = vld [vmem:[%s3498_s7 + $0x1c8] sm:$0xff]  ;;  %v1318_v61 = vld [vmem:[%s3498_s7 + $0x98] sm:$0xff]  ;;  %v2245_v45 = vld [vmem:[%s3498_s7 + $0x100] sm:$0xff] }
 0x13f   : > { %v924_v62 = vsel %vm502_vm0, %v921_v50, %v923_v59  ;;  %v926_v1 = vsel %vm502_vm0, %v923_v59, %v2584_v3  ;;  %v1182_v10 = vsel %vm572_vm2, %v1179_v2, %v1181_v7  ;;  %v1184_v13 = vsel %vm572_vm2, %v1181_v7, %v2590_v5  ;;  %v1320_v50 = vld [vmem:[%s3498_s7 + $0xa8] sm:$0xff]  ;;  %1462 = vmatpush.msrb.mxu2 %v1304_v49  ;;  %v1302_v59 = vld [vmem:[%s3498_s7 + $0x18] sm:$0xff]  ;;  %v1301_v2 = vld [vmem:[%s3498_s7 + $0x10] sm:$0xff] }
 0x140   : > { %2186 = vmatmul.msk.f32.gmra.mxu0 %vm927_vm6, %v924_v62  ;;  %2190 = vmatmul.msk.f32.gmra.mxu1 %vm927_vm6, %v924_v62  ;;  %v1082_v14 = vsel %vm537_vm1, %v1079_v9, %v1081_v12  ;;  %v1084_v15 = vsel %vm537_vm1, %v1081_v12, %v2587_v4  ;;  %v2252_v7 = vld [vmem:[%s3498_s7 + $0x138] sm:$0xff]  ;;  %v2251_v12 = vld [vmem:[%s3498_s7 + $0x130] sm:$0xff]  ;;  %v2246_v38 = vld [vmem:[%s3498_s7 + $0x108] sm:$0xff] }
 0x141   : > { %1397 = vmatpush.msrb.mxu0 %v2257_v43  ;;  %1426 = vmatpush.msrb.mxu1 %v2273_v44  ;;  %v2268_v9 = vld [vmem:[%s3498_s7 + $0x1b8] sm:$0xff]  ;;  %v2262_v40 = vld [vmem:[%s3498_s7 + $0x188] sm:$0xff]  ;;  %v2261_v46 = vld [vmem:[%s3498_s7 + $0x180] sm:$0xff] }
 0x142   : > { %1491 = vmatpush.msrb.mxu3 %v1320_v50  ;;  %1463 = vmatpush.msrb.mxu2 %v1303_v55  ;;  %v2294_v49 = vld [vmem:[%s3498_s7 + $0x278] sm:$0xff] }
 0x143   : > { %v787_v63 = vpop.f32.mrf.mxu2  ;;  %1398 = vmatpush.msrb.mxu0 %v2256_v47  ;;  %1427 = vmatpush.msrb.mxu1 %v2272_v48  ;;  %v2321_v47 = vld [vmem:[%s3498_s7 + $0x350] sm:$0xff]  ;;  %v2310_v50 = vld [vmem:[%s3498_s7 + $0x2f8] sm:$0xff] }
 0x144   : > { %v846_v0 = vpop.f32.mrf.mxu3  ;;  %1492 = vmatpush.msrb.mxu3 %v1319_v56  ;;  %1464 = vmatpush.msrb.mxu2 %v1302_v59  ;;  %v2337_v48 = vld [vmem:[%s3498_s7 + $0x3d0] sm:$0xff]  ;;  %v2292_v59 = vld [vmem:[%s3498_s7 + $0x268] sm:$0xff] }
 0x145   : > { %1027 = vmatmul.f32.gmra.mxu2 %v2422_v8  ;;  %1056 = vmatmul.f32.gmra.mxu3 %v2422_v8  ;;  %v2253_v0 = vld [vmem:[%s3498_s7 + $0x140] sm:$0xff] }
 0x146   : > { %1399 = vmatpush.msrb.mxu0 %v2255_v51  ;;  %1428 = vmatpush.msrb.mxu1 %v2271_v52  ;;  %v2320_v51 = vld [vmem:[%s3498_s7 + $0x348] sm:$0xff] }
 0x147   : > { %1493 = vmatpush.msrb.mxu3 %v1318_v61  ;;  %1465 = vmatpush.msrb.mxu2 %v1301_v2  ;;  %v2336_v52 = vld [vmem:[%s3498_s7 + $0x3c8] sm:$0xff] }
 0x148   : > { %2187 = vmatmul.msk.f32.gmra.mxu0 %vm927_vm6, %v926_v1  ;;  %2191 = vmatmul.msk.f32.gmra.mxu1 %vm927_vm6, %v926_v1  ;;  %v2269_v1 = vld [vmem:[%s3498_s7 + $0x1c0] sm:$0xff]  ;;  %v2308_v61 = vld [vmem:[%s3498_s7 + $0x2e8] sm:$0xff] }
 0x149   : > { %1400 = vmatpush.msrb.mxu0 %v2254_v57  ;;  %1429 = vmatpush.msrb.mxu1 %v2270_v58  ;;  %v2319_v57 = vld [vmem:[%s3498_s7 + $0x340] sm:$0xff] }
 0x14a   : > { %v2335_v58 = vld [vmem:[%s3498_s7 + $0x3c0] sm:$0xff] }
 0x14b   : > { %v1019_v16 = vpop.f32.mrf.mxu2  ;;  %1401 = vmatpush.msrb.mxu0 %v2253_v0  ;;  %1430 = vmatpush.msrb.mxu1 %v2269_v1  ;;  %v2318_v0 = vld [vmem:[%s3498_s7 + $0x338] sm:$0xff] }
 0x14c   : > { %v1048_v17 = vpop.f32.mrf.mxu3  ;;  %v1299_v16 = vld [vmem:[%s3498_s7] sm:$0xff]  ;;  %v2334_v1 = vld [vmem:[%s3498_s7 + $0x3b8] sm:$0xff] }
 0x14d   : > { %2237 = vmatmul.msk.f32.vlgmr.msra.gmra.mxu2 %vm927_vm6, %v1180_v6  ;;  %2241 = vmatmul.msk.f32.vlgmr.msra.gmra.mxu3 %vm927_vm6, %v1180_v6  ;;  %v1317_v6 = vld [vmem:[%s3498_s7 + $0x90] sm:$0xff]  ;;  %v1315_v17 = vld [vmem:[%s3498_s7 + $0x80] sm:$0xff] }
 0x14e   : > { %1494 = vmatpush.msrb.mxu3 %v1317_v6  ;;  %1402 = vmatpush.msrb.mxu0 %v2252_v7  ;;  %v2291_v7 = vld [vmem:[%s3498_s7 + $0x260] sm:$0xff] }
 0x14f   : > { %1431 = vmatpush.msrb.mxu1 %v2268_v9  ;;  %v2307_v9 = vld [vmem:[%s3498_s7 + $0x2e0] sm:$0xff] }
 0x150   : > { %2188 = vmatmul.msk.f32.gmra.mxu0 %vm927_vm6, %v2584_v3  ;;  %2192 = vmatmul.msk.f32.gmra.mxu1 %vm927_vm6, %v2584_v3 }
 0x151   : > { %1403 = vmatpush.msrb.mxu0 %v2251_v12  ;;  %v2290_v12 = vld [vmem:[%s3498_s7 + $0x258] sm:$0xff] }
 0x153   : > { %1404 = vmatpush.msrb.mxu0 %v2250_v20 }
 0x155   : > { %2238 = vmatmul.msk.f32.gmra.mxu2 %vm927_vm6, %v1182_v10  ;;  %2242 = vmatmul.msk.f32.gmra.mxu3 %vm927_vm6, %v1182_v10  ;;  %v1300_v10 = vld [vmem:[%s3498_s7 + $0x8] sm:$0xff] }
 0x156   : > { %1466 = vmatpush.msrb.mxu2 %v1300_v10  ;;  %1405 = vmatpush.msrb.mxu0 %v2249_v24  ;;  %v2317_v10 = vld [vmem:[%s3498_s7 + $0x330] sm:$0xff]  ;;  %v2288_v24 = vld [vmem:[%s3498_s7 + $0x248] sm:$0xff] }
 0x158   : > { %2213 = vmatmul.msk.f32.vlgmr.msra.gmra.mxu0 %vm927_vm6, %v1080_v11  ;;  %2217 = vmatmul.msk.f32.vlgmr.msra.gmra.mxu1 %vm927_vm6, %v1080_v11  ;;  %v1316_v11 = vld [vmem:[%s3498_s7 + $0x88] sm:$0xff] }
 0x159   : > { %1495 = vmatpush.msrb.mxu3 %v1316_v11  ;;  %1467 = vmatpush.msrb.mxu2 %v1299_v16  ;;  %v2333_v11 = vld [vmem:[%s3498_s7 + $0x3b0] sm:$0xff]  ;;  %v2316_v16 = vld [vmem:[%s3498_s7 + $0x328] sm:$0xff] }
 0x15a   : > { %1406 = vmatpush.msrb.mxu0 %v2248_v28 }
 0x15b   : > { %1496 = vmatpush.msrb.mxu3 %v1315_v17  ;;  %1682 = vmatpush.msra.mxu2 %v2326_v22  ;;  %v2332_v17 = vld [vmem:[%s3498_s7 + $0x3a8] sm:$0xff]  ;;  %v2315_v22 = vld [vmem:[%s3498_s7 + $0x320] sm:$0xff] }
 0x15c   : > { %1407 = vmatpush.msrb.mxu0 %v2247_v32  ;;  %v2313_v32 = vld [vmem:[%s3498_s7 + $0x310] sm:$0xff] }
 0x15d   : > { %2239 = vmatmul.msk.f32.gmra.mxu2 %vm927_vm6, %v1184_v13  ;;  %2243 = vmatmul.msk.f32.gmra.mxu3 %vm927_vm6, %v1184_v13  ;;  %v2267_v13 = vld [vmem:[%s3498_s7 + $0x1b0] sm:$0xff] }
 0x15e   : > { %1432 = vmatpush.msrb.mxu1 %v2267_v13  ;;  %1711 = vmatpush.msra.mxu3 %v2342_v23  ;;  %v2306_v13 = vld [vmem:[%s3498_s7 + $0x2d8] sm:$0xff]  ;;  %v2331_v23 = vld [vmem:[%s3498_s7 + $0x3a0] sm:$0xff] }
 0x15f   : > { %1683 = vmatpush.msra.mxu2 %v2325_v26  ;;  %1408 = vmatpush.msrb.mxu0 %v2246_v38  ;;  %v2314_v26 = vld [vmem:[%s3498_s7 + $0x318] sm:$0xff]  ;;  %v2328_v38 = vld [vmem:[%s3498_s7 + $0x388] sm:$0xff] }
 0x160   : > { %2214 = vmatmul.msk.f32.gmra.mxu0 %vm927_vm6, %v1082_v14  ;;  %2218 = vmatmul.msk.f32.gmra.mxu1 %vm927_vm6, %v1082_v14 }
 0x161   : > { %1433 = vmatpush.msrb.mxu1 %v2266_v21  ;;  %1712 = vmatpush.msra.mxu3 %v2341_v27  ;;  %v2330_v27 = vld [vmem:[%s3498_s7 + $0x398] sm:$0xff] }
 0x162   : > { %1684 = vmatpush.msra.mxu2 %v2324_v30  ;;  %1409 = vmatpush.msrb.mxu0 %v2245_v45  ;;  %v2287_v30 = vld [vmem:[%s3498_s7 + $0x240] sm:$0xff] }
 0x163   : > { %1434 = vmatpush.msrb.mxu1 %v2265_v25  ;;  %1713 = vmatpush.msra.mxu3 %v2340_v31  ;;  %v2304_v25 = vld [vmem:[%s3498_s7 + $0x2c8] sm:$0xff]  ;;  %v2303_v31 = vld [vmem:[%s3498_s7 + $0x2c0] sm:$0xff] }
 0x164   : > { %1685 = vmatpush.msra.mxu2 %v2323_v36  ;;  %1565 = vmatpush.msra.mxu0 %v2294_v49  ;;  %v1261_v36 = vld [vmem:[%s3497_s6] sm:$0x3]  ;;  %v2300_v49 = vld [vmem:[%s3498_s7 + $0x2a8] sm:$0xff] }
 0x165   : > { %2240 = vmatmul.msk.f32.gmra.mxu2 %vm927_vm6, %v2590_v5  ;;  %2244 = vmatmul.msk.f32.gmra.mxu3 %vm927_vm6, %v2590_v5 }
 0x166   : > { %1435 = vmatpush.msrb.mxu1 %v2264_v29  ;;  %1714 = vmatpush.msra.mxu3 %v2339_v37  ;;  %v2312_v37 = vld [vmem:[%s3498_s7 + $0x308] sm:$0xff] }
 0x167   : > { %1686 = vmatpush.msra.mxu2 %v2322_v41 }
 0x168   : > { %2215 = vmatmul.msk.f32.gmra.mxu0 %vm927_vm6, %v1084_v15  ;;  %2219 = vmatmul.msk.f32.gmra.mxu1 %vm927_vm6, %v1084_v15 }
 0x169   : > { %1436 = vmatpush.msrb.mxu1 %v2263_v33  ;;  %1715 = vmatpush.msra.mxu3 %v2338_v42  ;;  %v2329_v33 = vld [vmem:[%s3498_s7 + $0x390] sm:$0xff] }
 0x16a   : > { %1687 = vmatpush.msra.mxu2 %v2321_v47  ;;  %v2285_v42 = vld [vmem:[%s3498_s7 + $0x230] sm:$0xff]  ;;  %v1264_v47 = vperm.slane %v1261_v36, 1 }
 0x16b   : > { %1437 = vmatpush.msrb.mxu1 %v2262_v40  ;;  %1716 = vmatpush.msra.mxu3 %v2337_v48  ;;  %v2284_v48 = vld [vmem:[%s3498_s7 + $0x228] sm:$0xff] }
 0x16c   : > { %1688 = vmatpush.msra.mxu2 %v2320_v51 }
 0x16d   : > { %1468 = vmatmul.f32.vlgmr.msrb.gmra.mxu2 %v2422_v8  ;;  %1497 = vmatmul.f32.vlgmr.msrb.gmra.mxu3 %v2422_v8 }
 0x16e   : > { %1438 = vmatpush.msrb.mxu1 %v2261_v46  ;;  %1717 = vmatpush.msra.mxu3 %v2336_v52  ;;  %v1263_v46 = vperm.slane %v1261_v36, 0 }
 0x16f   : > { %1689 = vmatpush.msra.mxu2 %v2319_v57 }
 0x170   : > { %2216 = vmatmul.msk.f32.gmra.mxu0 %vm927_vm6, %v2587_v4  ;;  %2220 = vmatmul.msk.f32.gmra.mxu1 %vm927_vm6, %v2587_v4 }
 0x171   : > { %1594 = vmatpush.msra.mxu1 %v2310_v50  ;;  %1718 = vmatpush.msra.mxu3 %v2335_v58  ;;  %v2282_v58 = vld [vmem:[%s3498_s7 + $0x218] sm:$0xff] }
 0x172   : > { %1690 = vmatpush.msra.mxu2 %v2318_v0 }
 0x173   : > { %1719 = vmatpush.msra.mxu3 %v2334_v1  ;;  %v2281_v1 = vld [vmem:[%s3498_s7 + $0x210] sm:$0xff] }
 0x174   : > { %1691 = vmatpush.msra.mxu2 %v2317_v10 }
 0x175   : > { %1720 = vmatpush.msra.mxu3 %v2333_v11  ;;  %v2280_v11 = vld [vmem:[%s3498_s7 + $0x208] sm:$0xff] }
 0x176   : > { %1692 = vmatpush.msra.mxu2 %v2316_v16  ;;  %v2296_v16 = vld [vmem:[%s3498_s7 + $0x288] sm:$0xff] }
 0x177   : > { %1721 = vmatpush.msra.mxu3 %v2332_v17  ;;  %v2279_v17 = vld [vmem:[%s3498_s7 + $0x200] sm:$0xff] }
 0x178   : > { %1693 = vmatpush.msra.mxu2 %v2315_v22 }
 0x179   : > { %1722 = vmatpush.msra.mxu3 %v2331_v23 }
 0x17a   : > { %1694 = vmatpush.msra.mxu2 %v2314_v26 }
 0x17b   : > { %1723 = vmatpush.msra.mxu3 %v2330_v27 }
 0x17c   : > { %1695 = vmatpush.msra.mxu2 %v2313_v32 }
 0x17d   : > { %1724 = vmatpush.msra.mxu3 %v2329_v33 }
 0x17e   : > { %1696 = vmatpush.msra.mxu2 %v2312_v37 }
 0x17f   : > { %1725 = vmatpush.msra.mxu3 %v2328_v38  ;;  %v2364_v38 = vld [vmem:[%s3500_s9 + $0xb8] sm:$0xff] }
 0x1b5   : > { %v953_v53 = vpop.f32.mrf.mxu0  ;;  %v982_v54 = vpop.f32.mrf.mxu1 }
 0x1b6   : > { %v2293_v53 = vld [vmem:[%s3498_s7 + $0x270] sm:$0xff] }
 0x1b7   : > { %v2309_v54 = vld [vmem:[%s3498_s7 + $0x2f0] sm:$0xff]  ;;  %1566 = vmatpush.msra.mxu0 %v2293_v53 }
 0x1b8   : > { %v2988_v62 = vpop.f32.mrf.mxu2  ;;  %v2990_v63 = vpop.f32.mrf.mxu3  ;;  %1595 = vmatpush.msra.mxu1 %v2309_v54  ;;  %v2283_v54 = vld [vmem:[%s3498_s7 + $0x220] sm:$0xff] }
 0x1b9   : > { %1567 = vmatpush.msra.mxu0 %v2292_v59  ;;  %v2298_v59 = vld [vmem:[%s3498_s7 + $0x298] sm:$0xff] }
 0x1ba   : > { %1596 = vmatpush.msra.mxu1 %v2308_v61 }
 0x1bb   : > { %1568 = vmatpush.msra.mxu0 %v2291_v7 }
 0x1bc   : > { %1597 = vmatpush.msra.mxu1 %v2307_v9 }
 0x1bd   : > { %v3022_v14 = vpop.f32.mrf.mxu0  ;;  %v3024_v15 = vpop.f32.mrf.mxu1  ;;  %1569 = vmatpush.msra.mxu0 %v2290_v12 }
 0x1be   : > { %1598 = vmatpush.msra.mxu1 %v2306_v13  ;;  %v1023_v40 = vadd.f32 %v2988_v62, %v3022_v14  ;;  %v1052_v41 = vadd.f32 %v2990_v63, %v3024_v15  ;;  %v2311_v62 = vld [vmem:[%s3498_s7 + $0x300] sm:$0xff] }
 0x1bf   : > { %v2327_v63 = vld [vmem:[%s3498_s7 + $0x380] sm:$0xff]  ;;  %1697 = vmatpush.msra.mxu2 %v2311_v62  ;;  %v2375_v62 = vld [vmem:[%s3500_s9 + $0xf0] sm:$0xff] }
 0x1c0   : > { %v1025_v18 = vpop.f32.mrf.mxu2  ;;  %v1054_v19 = vpop.f32.mrf.mxu3  ;;  %1726 = vmatpush.msra.mxu3 %v2327_v63  ;;  %v2349_v63 = vld [vmem:[%s3500_s9 + $0x70] sm:$0xff] }
 0x1c1   : > { %v2289_v18 = vld [vmem:[%s3498_s7 + $0x250] sm:$0xff]  ;;  %1900 = vmatpush.msrb.mxu2 %v2364_v38 }
 0x1c2   : > { %v2305_v19 = vld [vmem:[%s3498_s7 + $0x2d0] sm:$0xff]  ;;  %1570 = vmatpush.msra.mxu0 %v2289_v18 }
 0x1c3   : > { %1599 = vmatpush.msra.mxu1 %v2305_v19 }
 0x1c4   : > { %1571 = vmatpush.msra.mxu0 %v2288_v24 }
 0x1c5   : > { %v959_v34 = vpop.f32.mrf.mxu0  ;;  %v988_v35 = vpop.f32.mrf.mxu1  ;;  %1600 = vmatpush.msra.mxu1 %v2304_v25 }
 0x1c6   : > { %v2286_v34 = vld [vmem:[%s3498_s7 + $0x238] sm:$0xff]  ;;  %1572 = vmatpush.msra.mxu0 %v2287_v30 }
 0x1c7   : > { %v2302_v35 = vld [vmem:[%s3498_s7 + $0x2b8] sm:$0xff]  ;;  %1601 = vmatpush.msra.mxu1 %v2303_v31 }
 0x1c8   : > { %v1028_v43 = vpop.f32.mrf.mxu2  ;;  %v1057_v44 = vpop.f32.mrf.mxu3  ;;  %1573 = vmatpush.msra.mxu0 %v2286_v34 }
 0x1c9   : > { %v2301_v43 = vld [vmem:[%s3498_s7 + $0x2b0] sm:$0xff]  ;;  %1602 = vmatpush.msra.mxu1 %v2302_v35 }
 0x1ca   : > { %1574 = vmatpush.msra.mxu0 %v2285_v42  ;;  %v2376_v42 = vld [vmem:[%s3500_s9 + $0xf8] sm:$0xff] }
 0x1cb   : > { %1603 = vmatpush.msra.mxu1 %v2301_v43  ;;  %1955 = vmatpush.msrb.mxu3 %v2376_v42  ;;  %v2350_v43 = vld [vmem:[%s3500_s9 + $0x78] sm:$0xff] }
 0x1cc   : > { %1575 = vmatpush.msra.mxu0 %v2284_v48 }
 0x1cd   : > { %v962_v55 = vpop.f32.mrf.mxu0  ;;  %v991_v56 = vpop.f32.mrf.mxu1  ;;  %1604 = vmatpush.msra.mxu1 %v2300_v49  ;;  %1956 = vmatpush.msrb.mxu3 %v2375_v62 }
 0x1ce   : > { %v2299_v55 = vld [vmem:[%s3498_s7 + $0x2a0] sm:$0xff]  ;;  %1576 = vmatpush.msra.mxu0 %v2283_v54 }
 0x1cf   : > { %1605 = vmatpush.msra.mxu1 %v2299_v55  ;;  %v2374_v55 = vld [vmem:[%s3500_s9 + $0xe8] sm:$0xff] }
 0x1d0   : > { %v1212_v2 = vpop.f32.mrf.mxu2  ;;  %v1241_v6 = vpop.f32.mrf.mxu3  ;;  %1577 = vmatpush.msra.mxu0 %v2282_v58  ;;  %1957 = vmatpush.msrb.mxu3 %v2374_v55 }
 0x1d1   : > { %v2297_v2 = vld [vmem:[%s3498_s7 + $0x290] sm:$0xff]  ;;  %1606 = vmatpush.msra.mxu1 %v2298_v59 }
 0x1d2   : > { %1578 = vmatpush.msra.mxu0 %v2281_v1  ;;  %v2360_v1 = vld [vmem:[%s3500_s9 + $0x98] sm:$0xff] }
 0x1d3   : > { %1607 = vmatpush.msra.mxu1 %v2297_v2  ;;  %v1770_v2 = vld [vmem:[%s3500_s9 + $0x10] sm:$0xff] }
 0x1d4   : > { %1579 = vmatpush.msra.mxu0 %v2280_v11  ;;  %v2372_v11 = vld [vmem:[%s3500_s9 + $0xd8] sm:$0xff] }
 0x1d5   : > { %v1112_v20 = vpop.f32.mrf.mxu0  ;;  %v1141_v21 = vpop.f32.mrf.mxu1  ;;  %1608 = vmatpush.msra.mxu1 %v2296_v16 }
 0x1d6   : > { %v2295_v21 = vld [vmem:[%s3498_s7 + $0x280] sm:$0xff]  ;;  %1580 = vmatpush.msra.mxu0 %v2279_v17 }
 0x1d7   : > { %1609 = vmatpush.msra.mxu1 %v2295_v21  ;;  %v2344_v21 = vld [vmem:[%s3500_s9 + $0x48] sm:$0xff] }
 0x1d8   : > { %v1215_v28 = vpop.f32.mrf.mxu2  ;;  %v1244_v29 = vpop.f32.mrf.mxu3 }
 0x1dd   : > { %v1115_v44 = vpop.f32.mrf.mxu0  ;;  %v1144_v45 = vpop.f32.mrf.mxu1 }
 0x1de   : > { %v1155_v14 = vadd.f32 %v1115_v44, %v1023_v40  ;;  %v1156_v15 = vadd.f32 %v1144_v45, %v1052_v41  ;;  %v1775_v44 = vld [vmem:[%s3500_s9 + $0x38] sm:$0xff]  ;;  %v2363_v45 = vld [vmem:[%s3500_s9 + $0xb0] sm:$0xff] }
 0x1df   : > { %1901 = vmatpush.msrb.mxu2 %v2363_v45 }
 0x1e0   : > { %v1255_v50 = vadd.f32 %v1215_v28, %v1155_v14  ;;  %v1256_v51 = vadd.f32 %v1244_v29, %v1156_v15  ;;  %v1218_v52 = vpop.f32.mrf.mxu2  ;;  %v1247_v53 = vpop.f32.mrf.mxu3  ;;  %v1774_v14 = vld [vmem:[%s3500_s9 + $0x30] sm:$0xff]  ;;  %v2362_v15 = vld [vmem:[%s3500_s9 + $0xa8] sm:$0xff] }
 0x1e1   : > { %1902 = vmatpush.msrb.mxu2 %v2362_v15  ;;  %v1771_v52 = vld [vmem:[%s3500_s9 + $0x18] sm:$0xff] }
 0x1e2   : > { %v1269_v56 = vadd.f32 %v1263_v46, %v1255_v50  ;;  %v1270_v57 = vadd.f32 %v1264_v47, %v1256_v51  ;;  %v1773_v50 = vld [vmem:[%s3500_s9 + $0x28] sm:$0xff]  ;;  %v1772_v51 = vld [vmem:[%s3500_s9 + $0x20] sm:$0xff] }
 0x1e4   : > { %v1277_v61 = vmax.f32 %v1269_v56, 0.0  ;;  %v1278_v0 = vmax.f32 %v1270_v57, 0.0  ;;  %v2348_v56 = vld [vmem:[%s3500_s9 + $0x68] sm:$0xff]  ;;  %v2361_v57 = vld [vmem:[%s3500_s9 + $0xa0] sm:$0xff] }
 0x1e5   : > { %v1118_v6 = vpop.f32.mrf.mxu0  ;;  %v1147_v7 = vpop.f32.mrf.mxu1  ;;  %1903 = vmatpush.msrb.mxu2 %v2361_v57 }
 0x1e6   : > { %v1293_v9 = vsel %vm613_vm3, %v1277_v61, 0.0  ;;  %2277 = vmatmul.msk.f32.gmra.mxu2 %vm613_vm3, %v1277_v61  ;;  %v1294_v10 = vsel %vm613_vm3, %v1278_v0, 0.0  ;;  %2278 = vmatmul.msk.f32.gmra.mxu3 %vm613_vm3, %v1278_v0  ;;  %v2373_v61 = vld [vmem:[%s3500_s9 + $0xe0] sm:$0xff]  ;;  %v1769_v6 = vld [vmem:[%s3500_s9 + $0x8] sm:$0xff] }
 0x1e7   : > { %v1373_v12 = vrot.slane %v1293_v9, 1  ;;  %v1376_v13 = vrot.slane %v1294_v10, 1  ;;  %v1661_v26 = vrot.slane %v1293_v9, 3  ;;  %v1664_v27 = vrot.slane %v1294_v10, 3  ;;  %v2347_v0 = vld [vmem:[%s3500_s9 + $0x60] sm:$0xff]  ;;  %1958 = vmatpush.msrb.mxu3 %v2373_v61  ;;  %1904 = vmatpush.msrb.mxu2 %v2360_v1 }
 0x1e8   : > { %v1221_v18 = vpop.f32.mrf.mxu2  ;;  %v1250_v19 = vpop.f32.mrf.mxu3  ;;  %v1544_v32 = vrot.slane %v1293_v9, 2  ;;  %v1547_v33 = vrot.slane %v1294_v10, 2  ;;  %v1768_v7 = vld [vmem:[%s3500_s9] sm:$0xff] }
 0x1e9   : > { %v1374_v60 = vsel %vm502_vm0, %v2584_v3, %v1373_v12  ;;  %v1377_v20 = vsel %vm502_vm0, %v2584_v3, %v1376_v13  ;;  %v1379_v24 = vsel %vm502_vm0, %v1373_v12, %v2584_v3  ;;  %v1381_v25 = vsel %vm502_vm0, %v1376_v13, %v2584_v3  ;;  %v2346_v12 = vld [vmem:[%s3500_s9 + $0x58] sm:$0xff]  ;;  %v2359_v13 = vld [vmem:[%s3500_s9 + $0x90] sm:$0xff]  ;;  %1959 = vmatpush.msrb.mxu3 %v2372_v11 }
 0x1ea   : > { %1410 = vmatmul.f32.vlgmr.msrb.gmra.mxu0 %v1374_v60  ;;  %1439 = vmatmul.f32.vlgmr.msrb.gmra.mxu1 %v1377_v20  ;;  %v1662_v28 = vsel %vm572_vm2, %v2590_v5, %v1661_v26  ;;  %v1665_v29 = vsel %vm572_vm2, %v2590_v5, %v1664_v27  ;;  %v1667_v30 = vsel %vm572_vm2, %v1661_v26, %v2590_v5  ;;  %v2371_v18 = vld [vmem:[%s3500_s9 + $0xd0] sm:$0xff]  ;;  %v2358_v60 = vld [vmem:[%s3500_s9 + $0x88] sm:$0xff] }
 0x1eb   : > { %v1669_v31 = vsel %vm572_vm2, %v1664_v27, %v2590_v5  ;;  %v1545_v34 = vsel %vm537_vm1, %v2587_v4, %v1544_v32  ;;  %v1548_v35 = vsel %vm537_vm1, %v2587_v4, %v1547_v33  ;;  %v1550_v36 = vsel %vm537_vm1, %v1544_v32, %v2587_v4  ;;  %1812 = vmatpush.msrb.mxu0 %v2350_v43  ;;  %v2345_v19 = vld [vmem:[%s3500_s9 + $0x50] sm:$0xff]  ;;  %v2370_v20 = vld [vmem:[%s3500_s9 + $0xc8] sm:$0xff]  ;;  %v2406_v43 = vld [vmem:[%s3499_s8] ss:$0 sm:$0xff] }
 0x1ec   : > { %v1552_v37 = vsel %vm537_vm1, %v1547_v33, %v2587_v4  ;;  %1848 = vmatpush.msrb.mxu1 %v1775_v44  ;;  %1905 = vmatpush.msrb.mxu2 %v2359_v13 }
 0x1ed   : > { %v1121_v22 = vpop.f32.mrf.mxu0  ;;  %v1150_v23 = vpop.f32.mrf.mxu1  ;;  %1813 = vmatpush.msrb.mxu0 %v2349_v63  ;;  %1960 = vmatpush.msrb.mxu3 %v2371_v18 }
 0x1ee   : > { %1474 = vmatmul.f32.gmra.mxu2 %v2422_v8  ;;  %1503 = vmatmul.f32.gmra.mxu3 %v2422_v8  ;;  %v2357_v22 = vld [vmem:[%s3500_s9 + $0x80] sm:$0xff] }
 0x1ef   : > { %1849 = vmatpush.msrb.mxu1 %v1774_v14  ;;  %1814 = vmatpush.msrb.mxu0 %v2348_v56  ;;  %v2369_v23 = vld [vmem:[%s3500_s9 + $0xc0] sm:$0xff] }
 0x1f0   : > { %v3320_v40 = vpop.f32.mrf.mxu2  ;;  %v3322_v41 = vpop.f32.mrf.mxu3  ;;  %1906 = vmatpush.msrb.mxu2 %v2358_v60  ;;  %1961 = vmatpush.msrb.mxu3 %v2370_v20 }
 0x1f1   : > { %1850 = vmatpush.msrb.mxu1 %v1773_v50  ;;  %1815 = vmatpush.msrb.mxu0 %v2347_v0 }
 0x1f2   : > { %1413 = vmatmul.f32.gmra.mxu0 %v1379_v24  ;;  %1442 = vmatmul.f32.gmra.mxu1 %v1381_v25  ;;  %v2343_v24 = vld [vmem:[%s3500_s9 + $0x40] sm:$0xff] }
 0x1f3   : > { %1851 = vmatpush.msrb.mxu1 %v1772_v51  ;;  %1816 = vmatpush.msrb.mxu0 %v2346_v12 }
 0x1f4   : > { %1907 = vmatpush.msrb.mxu2 %v2357_v22  ;;  %1962 = vmatpush.msrb.mxu3 %v2369_v23  ;;  %v2407_v23 = vld [vmem:[%s3501_s10] ss:$0 sm:$0xff] }
 0x1f5   : > { %1852 = vmatpush.msrb.mxu1 %v1771_v52  ;;  %1817 = vmatpush.msrb.mxu0 %v2345_v19 }
 0x1f6   : > { %1477 = vmatmul.f32.gmra.mxu2 %v2422_v8  ;;  %1506 = vmatmul.f32.gmra.mxu3 %v2422_v8 }
 0x1f7   : > { %1853 = vmatpush.msrb.mxu1 %v1770_v2  ;;  %1818 = vmatpush.msrb.mxu0 %v2344_v21 }
 0x1f9   : > { %1854 = vmatpush.msrb.mxu1 %v1769_v6  ;;  %1819 = vmatpush.msrb.mxu0 %v2343_v24 }
 0x1fa   : > { %1416 = vmatmul.f32.gmra.mxu0 %v2584_v3  ;;  %1445 = vmatmul.f32.gmra.mxu1 %v2584_v3 }
 0x1fb   : > { %1855 = vmatpush.msrb.mxu1 %v1768_v7 }
 0x1fe   : > { %1698 = vmatmul.f32.vlgmr.msra.gmra.mxu2 %v1662_v28  ;;  %1727 = vmatmul.f32.vlgmr.msra.gmra.mxu3 %v1665_v29 }
 0x202   : > { %1419 = vmatmul.f32.gmra.mxu0 %v2584_v3  ;;  %1448 = vmatmul.f32.gmra.mxu1 %v2584_v3 }
 0x206   : > { %1701 = vmatmul.f32.gmra.mxu2 %v1667_v30  ;;  %1730 = vmatmul.f32.gmra.mxu3 %v1669_v31 }
 0x20a   : > { %1581 = vmatmul.f32.vlgmr.msra.gmra.mxu0 %v1545_v34  ;;  %1610 = vmatmul.f32.vlgmr.msra.gmra.mxu1 %v1548_v35 }
 0x20e   : > { %1704 = vmatmul.f32.gmra.mxu2 %v2590_v5  ;;  %1733 = vmatmul.f32.gmra.mxu3 %v2590_v5 }
 0x212   : > { %1584 = vmatmul.f32.gmra.mxu0 %v1550_v36  ;;  %1613 = vmatmul.f32.gmra.mxu1 %v1552_v37 }
 0x216   : > { %1707 = vmatmul.f32.gmra.mxu2 %v2590_v5  ;;  %1736 = vmatmul.f32.gmra.mxu3 %v2590_v5 }
 0x21a   : > { %1616 = vmatmul.f32.gmra.mxu1 %v2587_v4  ;;  %1587 = vmatmul.f32.gmra.mxu0 %v2587_v4 }
 0x222   : > { %1619 = vmatmul.f32.gmra.mxu1 %v2587_v4  ;;  %1590 = vmatmul.f32.gmra.mxu0 %v2587_v4 }
 0x267   : > { %v1411_v46 = vpop.f32.mrf.mxu0  ;;  %v1440_v47 = vpop.f32.mrf.mxu1 }
 0x268   : > { %v1441_v27 = vadd.f32 %v1440_v47, %v1411_v46 }
 0x269   : > { %v3348_v48 = vpop.f32.mrf.mxu2  ;;  %v3350_v49 = vpop.f32.mrf.mxu3 }
 0x26a   : > { %v1470_v30 = vadd.f32 %v3320_v40, %v1441_v27 }
 0x26c   : > { %v1499_v34 = vadd.f32 %v3322_v41, %v1470_v30  ;;  %v2408_v30 = vld [vmem:[%s3502_s11 + $0x1] ss:$0 sm:$0xff] }
 0x26f   : > { %v1414_v53 = vpop.f32.mrf.mxu0  ;;  %v1443_v54 = vpop.f32.mrf.mxu1 }
 0x270   : > { %v1444_v33 = vadd.f32 %v1443_v54, %v1414_v53 }
 0x271   : > { %v1475_v58 = vpop.f32.mrf.mxu2  ;;  %v1504_v59 = vpop.f32.mrf.mxu3 }
 0x272   : > { %v1473_v44 = vadd.f32 %v3348_v48, %v1444_v33 }
 0x274   : > { %v1502_v41 = vadd.f32 %v3350_v49, %v1473_v44 }
 0x277   : > { %v1417_v9 = vpop.f32.mrf.mxu0  ;;  %v1446_v10 = vpop.f32.mrf.mxu1 }
 0x279   : > { %v1478_v16 = vpop.f32.mrf.mxu2  ;;  %v1507_v17 = vpop.f32.mrf.mxu3 }
 0x27f   : > { %v1420_v25 = vpop.f32.mrf.mxu0  ;;  %v1449_v26 = vpop.f32.mrf.mxu1 }
 0x281   : > { %v1699_v28 = vpop.f32.mrf.mxu2  ;;  %v1728_v29 = vpop.f32.mrf.mxu3 }
 0x282   : > { %v1729_v38 = vadd.f32 %v1728_v29, %v1699_v28 }
 0x287   : > { %v1582_v31 = vpop.f32.mrf.mxu0  ;;  %v1611_v32 = vpop.f32.mrf.mxu1 }
 0x288   : > { %v1612_v35 = vadd.f32 %v1611_v32, %v1582_v31 }
 0x289   : > { %v1702_v36 = vpop.f32.mrf.mxu2  ;;  %v1731_v37 = vpop.f32.mrf.mxu3 }
 0x28a   : > { %v1623_v42 = vadd.f32 %v1612_v35, %v1499_v34  ;;  %v1732_v50 = vadd.f32 %v1731_v37, %v1702_v36  ;;  %v2409_v34 = vld [vmem:[%s3502_s11 + $0x2] ss:$0 sm:$0xff]  ;;  %v2012_v35 = vmul.f32 0.0, %v2408_v30  ;;  %v2411_v37 = vld [vmem:[%s3502_s11 + $0x3] ss:$0 sm:$0xff] }
 0x28b   : > { %v2032_v39 = vmul.f32 0.0, %v2409_v34 }
 0x28c   : > { %v1740_v45 = vadd.f32 %v1729_v38, %v1623_v42  ;;  %v2019_v44 = vrot.slane %v2012_v35, 1 }
 0x28e   : > { %v1748_v62 = vadd.f32 %v2406_v43, %v1740_v45  ;;  %v2052_v45 = vmul.f32 0.0, %v2411_v37 }
 0x28f   : > { %v1585_v63 = vpop.f32.mrf.mxu0  ;;  %v1614_v40 = vpop.f32.mrf.mxu1 }
 0x290   : > { %v1752_v14 = vmax.f32 %v1748_v62, 0.0  ;;  %v1615_v15 = vadd.f32 %v1614_v40, %v1585_v63 }
 0x291   : > { %v1705_v46 = vpop.f32.mrf.mxu2  ;;  %v1734_v47 = vpop.f32.mrf.mxu3 }
 0x292   : > { %v1624_v51 = vadd.f32 %v1615_v15, %v1502_v41  ;;  %v1764_v52 = vsel %vm1756_vm8, %v1752_v14, 0.0  ;;  %v2039_v46 = vrot.slane %v2032_v39, 2 }
 0x293   : > { %2355 = vmatmul.msk.f32.vlgmr.msrb.gmra.mxu1 %vm927_vm6, %v1764_v52  ;;  %v1789_v57 = vrot.slane %v1764_v52, 1  ;;  %v1877_v58 = vrot.slane %v1764_v52, 2  ;;  %v1932_v0 = vrot.slane %v1764_v52, 3 }
 0x294   : > { %v1741_v53 = vadd.f32 %v1732_v50, %v1624_v51 }
 0x296   : > { %v1749_v54 = vadd.f32 %v2406_v43, %v1741_v53  ;;  %v2410_v43 = vld [vmem:[%s3502_s11] ss:$0 sm:$0xff] }
 0x297   : > { %v1617_v48 = vpop.f32.mrf.mxu1  ;;  %v1588_v55 = vpop.f32.mrf.mxu0 }
 0x298   : > { %v1753_v56 = vmax.f32 %v1749_v54, 0.0  ;;  %v2059_v55 = vrot.slane %v2052_v45, 3 }
 0x299   : > { %v1708_v59 = vpop.f32.mrf.mxu2  ;;  %v1737_v61 = vpop.f32.mrf.mxu3 }
 0x29a   : > { %v1790_v1 = vrot.slane %v1753_v56, 1  ;;  %v1878_v49 = vrot.slane %v1753_v56, 2  ;;  %v1933_v2 = vrot.slane %v1753_v56, 3 }
 0x29b   : > { %2356 = vmatmul.msk.f32.gmra.mxu1 %vm927_vm6, %v1753_v56 }
 0x29c   : > { %v1791_v6 = vsel %vm502_vm0, %v1789_v57, %v1790_v1  ;;  %v1879_v7 = vsel %vm537_vm1, %v1877_v58, %v1878_v49  ;;  %v1934_v9 = vsel %vm572_vm2, %v1932_v0, %v1933_v2  ;;  %v1793_v12 = vsel %vm502_vm0, %v1790_v1, %v2584_v3 }
 0x29d   : > { %2351 = vmatmul.msk.f32.vlgmr.msrb.gmra.mxu0 %vm927_vm6, %v1791_v6  ;;  %2365 = vmatmul.msk.f32.vlgmr.msrb.gmra.mxu2 %vm927_vm6, %v1879_v7  ;;  %v1881_v13 = vsel %vm537_vm1, %v1878_v49, %v2587_v4  ;;  %v1936_v16 = vsel %vm572_vm2, %v1933_v2, %v2590_v5 }
 0x29e   : > { %2377 = vmatmul.msk.f32.vlgmr.msrb.gmra.mxu3 %vm927_vm6, %v1934_v9 }
 0x29f   : > { %v1620_v10 = vpop.f32.mrf.mxu1  ;;  %v1591_v11 = vpop.f32.mrf.mxu0 }
 0x2a3   : > { %1862 = vmatmul.f32.gmra.mxu1 %v2422_v8 }
 0x2a5   : > { %2352 = vmatmul.msk.f32.gmra.mxu0 %vm927_vm6, %v1793_v12  ;;  %2366 = vmatmul.msk.f32.gmra.mxu2 %vm927_vm6, %v1881_v13 }
 0x2a6   : > { %2378 = vmatmul.msk.f32.gmra.mxu3 %vm927_vm6, %v1936_v16 }
 0x2ab   : > { %1865 = vmatmul.f32.gmra.mxu1 %v2422_v8 }
 0x2ad   : > { %2367 = vmatmul.msk.f32.gmra.mxu2 %vm927_vm6, %v2587_v4  ;;  %2353 = vmatmul.msk.f32.gmra.mxu0 %vm927_vm6, %v2584_v3 }
 0x2ae   : > { %2379 = vmatmul.msk.f32.gmra.mxu3 %vm927_vm6, %v2590_v5 }
 0x2b5   : > { %2368 = vmatmul.msk.f32.gmra.mxu2 %vm927_vm6, %v2587_v4  ;;  %2354 = vmatmul.msk.f32.gmra.mxu0 %vm927_vm6, %v2584_v3 }
 0x2b6   : > { %2380 = vmatmul.msk.f32.gmra.mxu3 %vm927_vm6, %v2590_v5 }
 0x310   : > { %v1857_v17 = vpop.f32.mrf.mxu1 }
 0x318   : > { %v1860_v8 = vpop.f32.mrf.mxu1 }
 0x31a   : > { %v1821_v18 = vpop.f32.mrf.mxu0 }
 0x31b   : > { %v1858_v19 = vadd.f32 %v1857_v17, %v1821_v18  ;;  %v2412_v18 = vld [vmem:[#allocation2] ss:$0 sm:$0xff] }
 0x320   : > { %v1909_v60 = vpop.f32.mrf.mxu2  ;;  %v1863_v20 = vpop.f32.mrf.mxu1 }
 0x321   : > { %v1920_v21 = vadd.f32 %v1909_v60, %v1858_v19  ;;  %v1964_v22 = vpop.f32.mrf.mxu3 }
 0x322   : > { %v1824_v24 = vpop.f32.mrf.mxu0 }
 0x323   : > { %v1975_v4 = vadd.f32 %v1964_v22, %v1920_v21  ;;  %v1861_v26 = vadd.f32 %v1860_v8, %v1824_v24 }
 0x325   : > { %v1982_v25 = vadd.f32 %v2407_v23, %v1975_v4 }
 0x327   : > { %v1985_v3 = vmax.f32 %v1982_v25, 0.0 }
 0x328   : > { %v1912_v27 = vpop.f32.mrf.mxu2  ;;  %v1866_v28 = vpop.f32.mrf.mxu1 }
 0x329   : > { %v1921_v5 = vadd.f32 %v1912_v27, %v1861_v26  ;;  %v1967_v29 = vpop.f32.mrf.mxu3  ;;  %v1994_v33 = vsel %vm1988_vm9, %v1985_v3, 0.0 }
 0x32a   : > { %v1827_v31 = vpop.f32.mrf.mxu0  ;;  %v2010_v38 = vmul.f32 %v2408_v30, %v1994_v33  ;;  %v2030_v63 = vmul.f32 %v2409_v34, %v1994_v33  ;;  %v2050_v53 = vmul.f32 %v2411_v37, %v1994_v33  ;;  %v2001_v54 = vmul.f32 %v2410_v43, %v1994_v33 }
 0x32b   : > { %v1976_v32 = vadd.f32 %v1967_v29, %v1921_v5 }
 0x32c   : > { %v2016_v50 = vrot.slane %v2010_v38, 1  ;;  %v2036_v56 = vrot.slane %v2030_v63, 2  ;;  %v2056_v49 = vrot.slane %v2050_v53, 3 }
 0x32d   : > { %v1983_v36 = vadd.f32 %v2407_v23, %v1976_v32 }
 0x32f   : > { %v1986_v42 = vmax.f32 %v1983_v36, 0.0 }
 0x330   : > { %v1915_v62 = vpop.f32.mrf.mxu2 }
 0x331   : > { %v2011_v40 = vmul.f32 %v2408_v30, %v1986_v42  ;;  %v2031_v14 = vmul.f32 %v2409_v34, %v1986_v42  ;;  %v2051_v41 = vmul.f32 %v2411_v37, %v1986_v42  ;;  %v1970_v15 = vpop.f32.mrf.mxu3  ;;  %v2002_v48 = vmul.f32 %v2410_v43, %v1986_v42 }
 0x332   : > { %v1830_v47 = vpop.f32.mrf.mxu0 }
 0x333   : > { %v2017_v51 = vrot.slane %v2011_v40, 1  ;;  %v2037_v52 = vrot.slane %v2031_v14, 2  ;;  %v2057_v58 = vrot.slane %v2051_v41, 3 }
 0x335   : > { %v2018_v57 = vsel %vm502_vm0, %v2016_v50, %v2017_v51  ;;  %v2020_v59 = vsel %vm502_vm0, %v2017_v51, %v2019_v44  ;;  %v2038_v1 = vsel %vm537_vm1, %v2036_v56, %v2037_v52  ;;  %v2040_v2 = vsel %vm537_vm1, %v2037_v52, %v2039_v46 }
 0x336   : > { %v2023_v61 = vadd.f32 %v2018_v57, %v2001_v54  ;;  %v2024_v0 = vadd.f32 %v2020_v59, %v2002_v48  ;;  %v2058_v10 = vsel %vm572_vm2, %v2056_v49, %v2057_v58  ;;  %v2060_v11 = vsel %vm572_vm2, %v2057_v58, %v2059_v55 }
 0x338   : > { %v2043_v6 = vadd.f32 %v2038_v1, %v2023_v61  ;;  %v2044_v7 = vadd.f32 %v2040_v2, %v2024_v0  ;;  %v1918_v9 = vpop.f32.mrf.mxu2 }
 0x339   : > { %v1973_v12 = vpop.f32.mrf.mxu3 }
 0x33a   : > { %v2063_v13 = vadd.f32 %v2058_v10, %v2043_v6  ;;  %v2064_v16 = vadd.f32 %v2060_v11, %v2044_v7 }
 0x33c   : > { %v2065_v17 = vsel %vm651_vm4, %v2063_v13, 0.0  ;;  %v2068_v8 = vsel %vm651_vm4, %v2064_v16, 0.0 }
 0x33d   : > { %2066 = vadd.xlane.f32.xlu1 %v2065_v17  ;;  %2069 = vadd.xlane.f32.xlu2 %v2068_v8 }
 0x3b0   : > { %v2067_v19 = vpop.xlane.xlu1 %2066  ;;  %v2070_v60 = vpop.xlane.xlu2 %2069 }
 0x3b1   : > { %v2075_v20 = vadd.f32 %v2412_v18, %v2067_v19  ;;  %v2076_v21 = vadd.f32 %v2412_v18, %v2070_v60 }
 0x3b3   : > { %2078 = vst.msk [vmem:[%s442_s29] sm:$0xff] %vm2077_vm10, %v2075_v20 }
 0x3b4   : > { %2079 = vst.msk [vmem:[%s442_s29 + $0x8] sm:$0xff] %vm2077_vm10, %v2076_v21 }
 0x3b5 PF: > { %s25_s27 = sadd.s32 1, %s2419_s27  }
 0x3b6   : > { %p22_p4 = scmp.ge.s32.totalorder %s25_s27, 4  }
 0x3b8   :  { %24 = sbr.rel (!%p22_p4) target bundleno = 3 (0x3), region = 120 }

</bundles_post_ra>
